<compile_context>
chip_gen: v7x
topology: tpu7x:2x2x1
jax: 0.10.0
libtpu: 0.0.40
codegen_flags: <defaults>
</compile_context>

<pallas_src>
import functools

import numpy as np
import jax
import jax.numpy as jnp
from jax import lax
from jax.experimental import pallas as pl
from jax.experimental.pallas import tpu as pltpu

EPS = 1e-5
MXU_DTYPE = jnp.bfloat16            # MXU operand dtype (accumulation is f32)
DEFAULT_MAX_TILE_P = 512            # spatial tile width (lanes); mult. of 128
VMEM_LIMIT_BYTES = 32 * 1024 * 1024


def _round_up(x, m):
    return (x + m - 1) // m * m


# ----------------------------------------------------------------------------
# Kernel A: conv matmul (MXU, bf16 operands, f32 acc) + per-tile IN statistics
#   patches (1, K, TP) bf16, w (Cout, K) bf16
#   -> y (1, Cout, TP) f32, stats (1, 1, Cout, 2) f32 = [sum, sum-of-squares]
# ----------------------------------------------------------------------------
def _conv_stats_kernel(patch_ref, w_ref, y_ref, stat_ref):
    x = patch_ref[0]                                               # (K, TP)
    y = jnp.dot(w_ref[...], x, preferred_element_type=jnp.float32)  # (Cout, TP)
    y_ref[0] = y
    s = jnp.sum(y, axis=1, keepdims=True)                          # (Cout, 1)
    ss = jnp.sum(y * y, axis=1, keepdims=True)                     # (Cout, 1)
    stat_ref[0, 0] = jnp.concatenate([s, ss], axis=1)              # (Cout, 2)


# ----------------------------------------------------------------------------
# Kernel B: y * a + b (per-channel InstanceNorm affine) (+ residual) (+ ReLU)
# ----------------------------------------------------------------------------
def _finish_kernel(y_ref, ab_ref, o_ref, *, apply_relu):
    y = y_ref[0]                                                   # (Cout, TP)
    a = ab_ref[0, :, 0:1]                                          # (Cout, 1)
    b = ab_ref[0, :, 1:2]
    out = y * a + b
    if apply_relu:
        out = jnp.maximum(out, 0.0)
    o_ref[0] = out.astype(o_ref.dtype)


def _finish_kernel_res(y_ref, ab_ref, res_ref, o_ref, *, apply_relu):
    y = y_ref[0]
    a = ab_ref[0, :, 0:1]
    b = ab_ref[0, :, 1:2]
    out = y * a + b + res_ref[0]
    if apply_relu:
        out = jnp.maximum(out, 0.0)
    o_ref[0] = out.astype(o_ref.dtype)


def fused_conv_instance_norm(patches, w_mat, p_true, tile_p,
                             residual=None, apply_relu=True):
    """patches: (N, K, P_pad) bf16 (lane-dense, zero-padded beyond p_true);
    w_mat: (Cout, K) bf16; residual: optional (N, Cout, P_pad) f32.
    Returns (N, Cout, P_pad) f32 (pad columns are garbage; caller slices)."""
    N, K, P_pad = patches.shape
    Cout = w_mat.shape[0]
    assert P_pad % tile_p == 0
    n_pt = P_pad // tile_p

    cp = pltpu.CompilerParams(dimension_semantics=("parallel", "parallel"),
                              vmem_limit_bytes=VMEM_LIMIT_BYTES)

    # --- pass 1: matmul + per-tile statistics -------------------------------
    y, stats = pl.pallas_call(
        _conv_stats_kernel,
        out_shape=(jax.ShapeDtypeStruct((N, Cout, P_pad), jnp.float32),
                   jax.ShapeDtypeStruct((N, n_pt, Cout, 2), jnp.float32)),
        grid=(N, n_pt),
        in_specs=[pl.BlockSpec((1, K, tile_p), lambda n, p: (n, 0, p)),
                  pl.BlockSpec((Cout, K), lambda n, p: (0, 0))],
        out_specs=(pl.BlockSpec((1, Cout, tile_p), lambda n, p: (n, 0, p)),
                   pl.BlockSpec((1, 1, Cout, 2), lambda n, p: (n, p, 0, 0))),
        compiler_params=cp,
    )(patches, w_mat)

    # Tiny O(N*Cout) reduction + rsqrt in XLA.  Zero-padded columns of
    # `patches` contribute exactly 0 to sum / sum-of-squares, so dividing by
    # the true spatial size is exact.
    tot = jnp.sum(stats, axis=1)                       # (N, Cout, 2)
    mean = tot[..., 0] / p_true
    var = tot[..., 1] / p_true - mean * mean           # single-pass variance
    rstd = lax.rsqrt(var + EPS)
    ab = jnp.stack([rstd, -mean * rstd], axis=-1)      # (N, Cout, 2)

    # --- pass 2: normalize (+residual) (+relu), tile by tile -----------------
    y_spec = pl.BlockSpec((1, Cout, tile_p), lambda n, p: (n, 0, p))
    ab_spec = pl.BlockSpec((1, Cout, 2), lambda n, p: (n, 0, 0))
    if residual is None:
        kern = functools.partial(_finish_kernel, apply_relu=apply_relu)
        in_specs = [y_spec, ab_spec]
        operands = (y, ab)
    else:
        kern = functools.partial(_finish_kernel_res, apply_relu=apply_relu)
        in_specs = [y_spec, ab_spec,
                    pl.BlockSpec((1, Cout, tile_p), lambda n, p: (n, 0, p))]
        operands = (y, ab, residual)

    return pl.pallas_call(
        kern,
        out_shape=jax.ShapeDtypeStruct((N, Cout, P_pad), jnp.float32),
        grid=(N, n_pt),
        in_specs=in_specs,
        out_specs=pl.BlockSpec((1, Cout, tile_p), lambda n, p: (n, 0, p)),
        compiler_params=cp,
    )(*operands)


# ----------------------------------------------------------------------------
# Glue: reflect pad + im2col (channel-major K, spatial P last: no transposes)
# ----------------------------------------------------------------------------
def im2col_nkp(xp, kh, kw, stride):
    """xp: (N, C, H, W) already padded. Returns (N, C*kh*kw, Ho*Wo), Ho, Wo.
    K ordering (c-major, then tap) matches w.reshape(Cout, Cin*kh*kw)."""
    N, C, H, W = xp.shape
    Ho = (H - kh) // stride + 1
    Wo = (W - kw) // stride + 1
    cols = []
    for i in range(kh):
        for j in range(kw):
            cols.append(xp[:, :, i:i + Ho * stride:stride, j:j + Wo * stride:stride])
    p = jnp.stack(cols, axis=2)                      # (N, C, kh*kw, Ho, Wo)
    return p.reshape(N, C * kh * kw, Ho * Wo), Ho, Wo
# TODO(synk): build the kh*kw tap reduction inside the kernel from a padded
# activation tile (avoids HBM-materialized im2col patches, kh*kw less traffic).


def conv_block(x, w, b, *, stride, padding, apply_relu, residual=None,
               max_tile_p=DEFAULT_MAX_TILE_P):
    """ConvolutionBlock(pad='reflect', norm='instance'); x in NCHW f32.
    `b` is intentionally unused: affine-free InstanceNorm cancels the conv
    bias exactly, so adding it is dead work."""
    del b
    assert max_tile_p % 128 == 0
    N, Cin, H, W = x.shape
    Cout, _, kh, kw = w.shape
    xp = jnp.pad(x, ((0, 0), (0, 0), (padding, padding), (padding, padding)),
                 mode="reflect")
    patches, Ho, Wo = im2col_nkp(xp, kh, kw, stride)
    P = Ho * Wo
    tile_p = min(max_tile_p, _round_up(P, 128))
    P_pad = _round_up(P, tile_p)
    patches = jnp.pad(patches, ((0, 0), (0, 0), (0, P_pad - P)))
    patches = patches.astype(MXU_DTYPE)
    w_mat = w.reshape(Cout, Cin * kh * kw).astype(MXU_DTYPE)
    res_flat = None
    if residual is not None:
        res_flat = residual.reshape(N, Cout, P)
        res_flat = jnp.pad(res_flat, ((0, 0), (0, 0), (0, P_pad - P)))
    out = fused_conv_instance_norm(patches, w_mat, float(P), tile_p,
                                   residual=res_flat, apply_relu=apply_relu)
    return out[:, :, :P].reshape(N, Cout, Ho, Wo)


# ----------------------------------------------------------------------------
# Encoder1 (parameters initialized deterministically in-script)
# ----------------------------------------------------------------------------
def init_conv(key, cin, cout, k):
    k1, k2 = jax.random.split(key)
    fan_in = cin * k * k
    w = jax.random.normal(k1, (cout, cin, k, k), jnp.float32) / np.sqrt(fan_in)
    b = 0.01 * jax.random.normal(k2, (cout,), jnp.float32)
    return w, b


def init_encoder1(key, base_ch, num_down, num_residual, input_ch=3):
    params = {}
    keys = jax.random.split(key, 1 + num_down + 2 * num_residual)
    ki = 0
    params["conv0"] = init_conv(keys[ki], input_ch, base_ch, 7); ki += 1
    ch = base_ch
    for i in range(1, num_down + 1):
        params[f"conv{i}"] = init_conv(keys[ki], ch, ch * 2, 4); ki += 1
        ch *= 2
    for i in range(num_residual):
        wa = init_conv(keys[ki], ch, ch, 3); ki += 1
        wb = init_conv(keys[ki], ch, ch, 3); ki += 1
        params[f"res{i}"] = (wa, wb)
    return params, ch


def encoder1_forward(params, x, base_ch, num_down, num_residual,
                     max_tile_p=DEFAULT_MAX_TILE_P):
    # conv0: k7 s1 p3, relu
    w, b = params["conv0"]
    x = conv_block(x, w, b, stride=1, padding=3, apply_relu=True,
                   max_tile_p=max_tile_p)
    # downsampling convs: k4 s2 p1, relu
    for i in range(1, num_down + 1):
        w, b = params[f"conv{i}"]
        x = conv_block(x, w, b, stride=2, padding=1, apply_relu=True,
                       max_tile_p=max_tile_p)
    # residual blocks: (conv k3 s1 p1, relu) -> (conv k3 s1 p1, none) + skip
    for i in range(num_residual):
        (wa, ba), (wb, bb) = params[f"res{i}"]
        h = conv_block(x, wa, ba, stride=1, padding=1, apply_relu=True,
                       max_tile_p=max_tile_p)
        x = conv_block(h, wb, bb, stride=1, padding=1, apply_relu=False,
                       residual=x, max_tile_p=max_tile_p)
    sides = []  # Encoder1.forward never appends to `sides`
    return x, sides[::-1]


# ----------------------------------------------------------------------------
# Pure-JAX reference (same bf16 MXU-operand rounding, f32 accumulation/math)
# ----------------------------------------------------------------------------
def ref_conv_block(x, w, b, *, stride, padding, apply_relu, residual=None):
    xp = jnp.pad(x, ((0, 0), (0, 0), (padding, padding), (padding, padding)),
                 mode="reflect")
    y = lax.conv_general_dilated(
        xp.astype(MXU_DTYPE), w.astype(MXU_DTYPE), (stride, stride), "VALID",
        dimension_numbers=("NCHW", "OIHW", "NCHW"),
        preferred_element_type=jnp.float32) + b[None, :, None, None]
    mean = y.mean(axis=(2, 3), keepdims=True)
    var = ((y - mean) ** 2).mean(axis=(2, 3), keepdims=True)
    y = (y - mean) * lax.rsqrt(var + EPS)
    if residual is not None:
        y = y + residual
    if apply_relu:
        y = jnp.maximum(y, 0.0)
    return y


def encoder1_ref(params, x, base_ch, num_down, num_residual):
    w, b = params["conv0"]
    x = ref_conv_block(x, w, b, stride=1, padding=3, apply_relu=True)
    for i in range(1, num_down + 1):
        w, b = params[f"conv{i}"]
        x = ref_conv_block(x, w, b, stride=2, padding=1, apply_relu=True)
    for i in range(num_residual):
        (wa, ba), (wb, bb) = params[f"res{i}"]
        h = ref_conv_block(x, wa, ba, stride=1, padding=1, apply_relu=True)
        x = ref_conv_block(h, wb, bb, stride=1, padding=1, apply_relu=False,
                           residual=x)
    return x


if __name__ == "__main__":
    # Small config: input_ch=3, base_ch=8, num_down=2, num_residual=2
    base_ch, num_down, num_residual, input_ch = 8, 2, 2, 3
    N, H, W = 2, 16, 16

    key = jax.random.PRNGKey(0)
    kx, kp = jax.random.split(key)
    x = jax.random.normal(kx, (N, input_ch, H, W), jnp.float32)
    params, out_ch = init_encoder1(kp, base_ch, num_down, num_residual, input_ch)

    ref = jax.block_until_ready(
        encoder1_ref(params, x, base_ch, num_down, num_residual))

    fwd = jax.jit(encoder1_forward, static_argnums=(2, 3, 4, 5))
    expected_shape = (N, out_ch, H // (2 ** num_down), W // (2 ** num_down))

    # max_tile_p=128 forces multiple spatial tiles on conv0 (P=256), exercising
    # the streamed cross-tile InstanceNorm statistics path; 512 is the default.
    for mtp in (DEFAULT_MAX_TILE_P, 128):
        out, sides = fwd(params, x, base_ch, num_down, num_residual, mtp)
        out = jax.block_until_ready(out)
        assert out.shape == expected_shape, (out.shape, expected_shape)
        assert sides == []
        np.testing.assert_allclose(np.asarray(out), np.asarray(ref),
                                   rtol=2e-3, atol=2e-3)

    print("KERNEL_OK")
</pallas_src>

<mosaic_0001>
module attributes {stable_mosaic.version = 11 : i64} {
  func.func @_conv_stats_kernel(%arg0: i32, %arg1: i32, %arg2: memref<1x147x256xbf16, #tpu.memory_space<vmem>>, %arg3: memref<8x147xbf16, #tpu.memory_space<vmem>>, %arg4: memref<1x8x256xf32, #tpu.memory_space<vmem>>, %arg5: memref<1x1x8x2xf32, #tpu.memory_space<vmem>>) attributes {dimension_semantics = [#tpu.dimension_semantics<parallel>, #tpu.dimension_semantics<parallel>], iteration_bounds = array<i64: 2, 1>, scalar_prefetch = 0 : i64, scratch_operands = 0 : i64, tpu.core_type = #tpu.core_type<tc>, window_params = [{transform_indices = @transform_0, window_bounds = array<i64: 1, 147, 256>}, {pipeline_mode = #tpu.pipeline_mode<synchronous>, transform_indices = @transform_1, window_bounds = array<i64: 8, 147>}, {transform_indices = @transform_2, window_bounds = array<i64: 1, 8, 256>}, {transform_indices = @transform_3, window_bounds = array<i64: 1, 1, 8, 2>}]} {
    %c0 = arith.constant 0 : index
    %c0_0 = arith.constant 0 : index
    %c0_1 = arith.constant 0 : index
    %0 = vector.load %arg2[%c0, %c0_0, %c0_1] : memref<1x147x256xbf16, #tpu.memory_space<vmem>>, vector<1x147x256xbf16>
    %1 = vector.shape_cast %0 : vector<1x147x256xbf16> to vector<147x256xbf16>
    %c0_2 = arith.constant 0 : index
    %c0_3 = arith.constant 0 : index
    %2 = vector.load %arg3[%c0_2, %c0_3] : memref<8x147xbf16, #tpu.memory_space<vmem>>, vector<8x147xbf16>
    %cst = arith.constant dense<0.000000e+00> : vector<8x256xf32>
    %3 = tpu.matmul %2, %1, %cst {dimension_numbers = #tpu.dot_dimension_numbers<[1], [0], [0], [1], [0, 0, 1, 1], [], []>} : vector<8x147xbf16>, vector<147x256xbf16>, vector<8x256xf32> -> vector<8x256xf32>
    %c0_4 = arith.constant 0 : index
    %c0_5 = arith.constant 0 : index
    %c0_6 = arith.constant 0 : index
    %4 = vector.load %arg4[%c0_4, %c0_5, %c0_6] : memref<1x8x256xf32, #tpu.memory_space<vmem>>, vector<1x8x256xf32>
    %5 = vector.shape_cast %4 : vector<1x8x256xf32> to vector<8x256xf32>
    %6 = vector.shape_cast %3 : vector<8x256xf32> to vector<1x8x256xf32>
    tpu.vector_store %arg4[%c0_4, %c0_5, %c0_6], %6 {strides = array<i32>} : memref<1x8x256xf32, #tpu.memory_space<vmem>>, vector<1x8x256xf32>,
    %cst_7 = arith.constant dense<0.000000e+00> : vector<8xf32>
    %7 = vector.multi_reduction <add>, %3, %cst_7 [1] : vector<8x256xf32> to vector<8xf32>
    %8 = vector.shape_cast %7 : vector<8xf32> to vector<8x1xf32>
    %9 = arith.mulf %3, %3 : vector<8x256xf32>
    %cst_8 = arith.constant dense<0.000000e+00> : vector<8xf32>
    %10 = vector.multi_reduction <add>, %9, %cst_8 [1] : vector<8x256xf32> to vector<8xf32>
    %11 = vector.shape_cast %10 : vector<8xf32> to vector<8x1xf32>
    %12 = tpu.concatenate %8, %11 in 1 : vector<8x1xf32>, vector<8x1xf32> -> vector<8x2xf32>
    %c0_9 = arith.constant 0 : index
    %c0_10 = arith.constant 0 : index
    %c0_11 = arith.constant 0 : index
    %c0_12 = arith.constant 0 : index
    %13 = vector.load %arg5[%c0_9, %c0_10, %c0_11, %c0_12] : memref<1x1x8x2xf32, #tpu.memory_space<vmem>>, vector<1x1x8x2xf32>
    %14 = vector.shape_cast %13 : vector<1x1x8x2xf32> to vector<8x2xf32>
    %15 = vector.shape_cast %12 : vector<8x2xf32> to vector<1x1x8x2xf32>
    tpu.vector_store %arg5[%c0_9, %c0_10, %c0_11, %c0_12], %15 {strides = array<i32>} : memref<1x1x8x2xf32, #tpu.memory_space<vmem>>, vector<1x1x8x2xf32>,
    return
  }
  func.func @transform_0(%arg0: i32, %arg1: i32) -> (i32, i32, i32) {
    %c0_i32 = arith.constant 0 : i32
    %c0_i32_0 = arith.constant 0 : i32
    return %arg0, %c0_i32, %arg1 : i32, i32, i32
  }
  func.func @transform_1(%arg0: i32, %arg1: i32) -> (i32, i32) {
    %c0_i32 = arith.constant 0 : i32
    %c0_i32_0 = arith.constant 0 : i32
    %c0_i32_1 = arith.constant 0 : i32
    return %c0_i32, %c0_i32_0 : i32, i32
  }
  func.func @transform_2(%arg0: i32, %arg1: i32) -> (i32, i32, i32) {
    %c0_i32 = arith.constant 0 : i32
    %c0_i32_0 = arith.constant 0 : i32
    return %arg0, %c0_i32, %arg1 : i32, i32, i32
  }
  func.func @transform_3(%arg0: i32, %arg1: i32) -> (i32, i32, i32, i32) {
    %c0_i32 = arith.constant 0 : i32
    %c0_i32_0 = arith.constant 0 : i32
    %c0_i32_1 = arith.constant 0 : i32
    return %arg0, %arg1, %c0_i32, %c0_i32_0 : i32, i32, i32, i32
  }
}

module attributes {stable_mosaic.version = 11 : i64} {
  func.func @_finish_kernel(%arg0: i32, %arg1: i32, %arg2: memref<1x8x256xf32, #tpu.memory_space<vmem>>, %arg3: memref<1x8x2xf32, #tpu.memory_space<vmem>>, %arg4: memref<1x8x256xf32, #tpu.memory_space<vmem>>) attributes {dimension_semantics = [#tpu.dimension_semantics<parallel>, #tpu.dimension_semantics<parallel>], iteration_bounds = array<i64: 2, 1>, scalar_prefetch = 0 : i64, scratch_operands = 0 : i64, tpu.core_type = #tpu.core_type<tc>, window_params = [{transform_indices = @transform_0, window_bounds = array<i64: 1, 8, 256>}, {transform_indices = @transform_1, window_bounds = array<i64: 1, 8, 2>}, {transform_indices = @transform_2, window_bounds = array<i64: 1, 8, 256>}]} {
    %c0 = arith.constant 0 : index
    %c0_0 = arith.constant 0 : index
    %c0_1 = arith.constant 0 : index
    %0 = vector.load %arg2[%c0, %c0_0, %c0_1] : memref<1x8x256xf32, #tpu.memory_space<vmem>>, vector<1x8x256xf32>
    %1 = vector.shape_cast %0 : vector<1x8x256xf32> to vector<8x256xf32>
    %c0_2 = arith.constant 0 : index
    %c0_3 = arith.constant 0 : index
    %c0_4 = arith.constant 0 : index
    %2 = vector.load %arg3[%c0_2, %c0_3, %c0_4] : memref<1x8x2xf32, #tpu.memory_space<vmem>>, vector<1x8x1xf32>
    %3 = vector.shape_cast %2 : vector<1x8x1xf32> to vector<8x1xf32>
    %c0_5 = arith.constant 0 : index
    %c0_6 = arith.constant 0 : index
    %c1 = arith.constant 1 : index
    %4 = vector.load %arg3[%c0_5, %c0_6, %c1] : memref<1x8x2xf32, #tpu.memory_space<vmem>>, vector<1x8x1xf32>
    %5 = vector.shape_cast %4 : vector<1x8x1xf32> to vector<8x1xf32>
    %6 = vector.broadcast %3 : vector<8x1xf32> to vector<8x256xf32>
    %7 = arith.mulf %1, %6 : vector<8x256xf32>
    %8 = vector.broadcast %5 : vector<8x1xf32> to vector<8x256xf32>
    %9 = arith.addf %7, %8 : vector<8x256xf32>
    %cst = arith.constant 0.000000e+00 : f32
    %10 = vector.broadcast %cst : f32 to vector<8x256xf32>
    %11 = arith.maximumf %9, %10 : vector<8x256xf32>
    %c0_7 = arith.constant 0 : index
    %c0_8 = arith.constant 0 : index
    %c0_9 = arith.constant 0 : index
    %12 = vector.load %arg4[%c0_7, %c0_8, %c0_9] : memref<1x8x256xf32, #tpu.memory_space<vmem>>, vector<1x8x256xf32>
    %13 = vector.shape_cast %12 : vector<1x8x256xf32> to vector<8x256xf32>
    %14 = vector.shape_cast %11 : vector<8x256xf32> to vector<1x8x256xf32>
    tpu.vector_store %arg4[%c0_7, %c0_8, %c0_9], %14 {strides = array<i32>} : memref<1x8x256xf32, #tpu.memory_space<vmem>>, vector<1x8x256xf32>,
    return
  }
  func.func @transform_0(%arg0: i32, %arg1: i32) -> (i32, i32, i32) {
    %c0_i32 = arith.constant 0 : i32
    %c0_i32_0 = arith.constant 0 : i32
    return %arg0, %c0_i32, %arg1 : i32, i32, i32
  }
  func.func @transform_1(%arg0: i32, %arg1: i32) -> (i32, i32, i32) {
    %c0_i32 = arith.constant 0 : i32
    %c0_i32_0 = arith.constant 0 : i32
    %c0_i32_1 = arith.constant 0 : i32
    return %arg0, %c0_i32, %c0_i32_0 : i32, i32, i32
  }
  func.func @transform_2(%arg0: i32, %arg1: i32) -> (i32, i32, i32) {
    %c0_i32 = arith.constant 0 : i32
    %c0_i32_0 = arith.constant 0 : i32
    return %arg0, %c0_i32, %arg1 : i32, i32, i32
  }
}

module attributes {stable_mosaic.version = 11 : i64} {
  func.func @_finish_kernel(%arg0: i32, %arg1: i32, %arg2: memref<1x16x128xf32, #tpu.memory_space<vmem>>, %arg3: memref<1x16x2xf32, #tpu.memory_space<vmem>>, %arg4: memref<1x16x128xf32, #tpu.memory_space<vmem>>) attributes {dimension_semantics = [#tpu.dimension_semantics<parallel>, #tpu.dimension_semantics<parallel>], iteration_bounds = array<i64: 2, 1>, scalar_prefetch = 0 : i64, scratch_operands = 0 : i64, tpu.core_type = #tpu.core_type<tc>, window_params = [{transform_indices = @transform_0, window_bounds = array<i64: 1, 16, 128>}, {transform_indices = @transform_1, window_bounds = array<i64: 1, 16, 2>}, {transform_indices = @transform_2, window_bounds = array<i64: 1, 16, 128>}]} {
    %c0 = arith.constant 0 : index
    %c0_0 = arith.constant 0 : index
    %c0_1 = arith.constant 0 : index
    %0 = vector.load %arg2[%c0, %c0_0, %c0_1] : memref<1x16x128xf32, #tpu.memory_space<vmem>>, vector<1x16x128xf32>
    %1 = vector.shape_cast %0 : vector<1x16x128xf32> to vector<16x128xf32>
    %c0_2 = arith.constant 0 : index
    %c0_3 = arith.constant 0 : index
    %c0_4 = arith.constant 0 : index
    %2 = vector.load %arg3[%c0_2, %c0_3, %c0_4] : memref<1x16x2xf32, #tpu.memory_space<vmem>>, vector<1x16x1xf32>
    %3 = vector.shape_cast %2 : vector<1x16x1xf32> to vector<16x1xf32>
    %c0_5 = arith.constant 0 : index
    %c0_6 = arith.constant 0 : index
    %c1 = arith.constant 1 : index
    %4 = vector.load %arg3[%c0_5, %c0_6, %c1] : memref<1x16x2xf32, #tpu.memory_space<vmem>>, vector<1x16x1xf32>
    %5 = vector.shape_cast %4 : vector<1x16x1xf32> to vector<16x1xf32>
    %6 = vector.broadcast %3 : vector<16x1xf32> to vector<16x128xf32>
    %7 = arith.mulf %1, %6 : vector<16x128xf32>
    %8 = vector.broadcast %5 : vector<16x1xf32> to vector<16x128xf32>
    %9 = arith.addf %7, %8 : vector<16x128xf32>
    %cst = arith.constant 0.000000e+00 : f32
    %10 = vector.broadcast %cst : f32 to vector<16x128xf32>
    %11 = arith.maximumf %9, %10 : vector<16x128xf32>
    %c0_7 = arith.constant 0 : index
    %c0_8 = arith.constant 0 : index
    %c0_9 = arith.constant 0 : index
    %12 = vector.load %arg4[%c0_7, %c0_8, %c0_9] : memref<1x16x128xf32, #tpu.memory_space<vmem>>, vector<1x16x128xf32>
    %13 = vector.shape_cast %12 : vector<1x16x128xf32> to vector<16x128xf32>
    %14 = vector.shape_cast %11 : vector<16x128xf32> to vector<1x16x128xf32>
    tpu.vector_store %arg4[%c0_7, %c0_8, %c0_9], %14 {strides = array<i32>} : memref<1x16x128xf32, #tpu.memory_space<vmem>>, vector<1x16x128xf32>,
    return
  }
  func.func @transform_0(%arg0: i32, %arg1: i32) -> (i32, i32, i32) {
    %c0_i32 = arith.constant 0 : i32
    %c0_i32_0 = arith.constant 0 : i32
    return %arg0, %c0_i32, %arg1 : i32, i32, i32
  }
  func.func @transform_1(%arg0: i32, %arg1: i32) -> (i32, i32, i32) {
    %c0_i32 = arith.constant 0 : i32
    %c0_i32_0 = arith.constant 0 : i32
    %c0_i32_1 = arith.constant 0 : i32
    return %arg0, %c0_i32, %c0_i32_0 : i32, i32, i32
  }
  func.func @transform_2(%arg0: i32, %arg1: i32) -> (i32, i32, i32) {
    %c0_i32 = arith.constant 0 : i32
    %c0_i32_0 = arith.constant 0 : i32
    return %arg0, %c0_i32, %arg1 : i32, i32, i32
  }
}

module attributes {stable_mosaic.version = 11 : i64} {
  func.func @_conv_stats_kernel(%arg0: i32, %arg1: i32, %arg2: memref<1x128x128xbf16, #tpu.memory_space<vmem>>, %arg3: memref<16x128xbf16, #tpu.memory_space<vmem>>, %arg4: memref<1x16x128xf32, #tpu.memory_space<vmem>>, %arg5: memref<1x1x16x2xf32, #tpu.memory_space<vmem>>) attributes {dimension_semantics = [#tpu.dimension_semantics<parallel>, #tpu.dimension_semantics<parallel>], iteration_bounds = array<i64: 2, 1>, scalar_prefetch = 0 : i64, scratch_operands = 0 : i64, tpu.core_type = #tpu.core_type<tc>, window_params = [{transform_indices = @transform_0, window_bounds = array<i64: 1, 128, 128>}, {pipeline_mode = #tpu.pipeline_mode<synchronous>, transform_indices = @transform_1, window_bounds = array<i64: 16, 128>}, {transform_indices = @transform_2, window_bounds = array<i64: 1, 16, 128>}, {transform_indices = @transform_3, window_bounds = array<i64: 1, 1, 16, 2>}]} {
    %c0 = arith.constant 0 : index
    %c0_0 = arith.constant 0 : index
    %c0_1 = arith.constant 0 : index
    %0 = vector.load %arg2[%c0, %c0_0, %c0_1] : memref<1x128x128xbf16, #tpu.memory_space<vmem>>, vector<1x128x128xbf16>
    %1 = vector.shape_cast %0 : vector<1x128x128xbf16> to vector<128x128xbf16>
    %c0_2 = arith.constant 0 : index
    %c0_3 = arith.constant 0 : index
    %2 = vector.load %arg3[%c0_2, %c0_3] : memref<16x128xbf16, #tpu.memory_space<vmem>>, vector<16x128xbf16>
    %cst = arith.constant dense<0.000000e+00> : vector<16x128xf32>
    %3 = tpu.matmul %2, %1, %cst {dimension_numbers = #tpu.dot_dimension_numbers<[1], [0], [0], [1], [0, 0, 1, 1], [], []>} : vector<16x128xbf16>, vector<128x128xbf16>, vector<16x128xf32> -> vector<16x128xf32>
    %c0_4 = arith.constant 0 : index
    %c0_5 = arith.constant 0 : index
    %c0_6 = arith.constant 0 : index
    %4 = vector.load %arg4[%c0_4, %c0_5, %c0_6] : memref<1x16x128xf32, #tpu.memory_space<vmem>>, vector<1x16x128xf32>
    %5 = vector.shape_cast %4 : vector<1x16x128xf32> to vector<16x128xf32>
    %6 = vector.shape_cast %3 : vector<16x128xf32> to vector<1x16x128xf32>
    tpu.vector_store %arg4[%c0_4, %c0_5, %c0_6], %6 {strides = array<i32>} : memref<1x16x128xf32, #tpu.memory_space<vmem>>, vector<1x16x128xf32>,
    %cst_7 = arith.constant dense<0.000000e+00> : vector<16xf32>
    %7 = vector.multi_reduction <add>, %3, %cst_7 [1] : vector<16x128xf32> to vector<16xf32>
    %8 = vector.shape_cast %7 : vector<16xf32> to vector<16x1xf32>
    %9 = arith.mulf %3, %3 : vector<16x128xf32>
    %cst_8 = arith.constant dense<0.000000e+00> : vector<16xf32>
    %10 = vector.multi_reduction <add>, %9, %cst_8 [1] : vector<16x128xf32> to vector<16xf32>
    %11 = vector.shape_cast %10 : vector<16xf32> to vector<16x1xf32>
    %12 = tpu.concatenate %8, %11 in 1 : vector<16x1xf32>, vector<16x1xf32> -> vector<16x2xf32>
    %c0_9 = arith.constant 0 : index
    %c0_10 = arith.constant 0 : index
    %c0_11 = arith.constant 0 : index
    %c0_12 = arith.constant 0 : index
    %13 = vector.load %arg5[%c0_9, %c0_10, %c0_11, %c0_12] : memref<1x1x16x2xf32, #tpu.memory_space<vmem>>, vector<1x1x16x2xf32>
    %14 = vector.shape_cast %13 : vector<1x1x16x2xf32> to vector<16x2xf32>
    %15 = vector.shape_cast %12 : vector<16x2xf32> to vector<1x1x16x2xf32>
    tpu.vector_store %arg5[%c0_9, %c0_10, %c0_11, %c0_12], %15 {strides = array<i32>} : memref<1x1x16x2xf32, #tpu.memory_space<vmem>>, vector<1x1x16x2xf32>,
    return
  }
  func.func @transform_0(%arg0: i32, %arg1: i32) -> (i32, i32, i32) {
    %c0_i32 = arith.constant 0 : i32
    %c0_i32_0 = arith.constant 0 : i32
    return %arg0, %c0_i32, %arg1 : i32, i32, i32
  }
  func.func @transform_1(%arg0: i32, %arg1: i32) -> (i32, i32) {
    %c0_i32 = arith.constant 0 : i32
    %c0_i32_0 = arith.constant 0 : i32
    %c0_i32_1 = arith.constant 0 : i32
    return %c0_i32, %c0_i32_0 : i32, i32
  }
  func.func @transform_2(%arg0: i32, %arg1: i32) -> (i32, i32, i32) {
    %c0_i32 = arith.constant 0 : i32
    %c0_i32_0 = arith.constant 0 : i32
    return %arg0, %c0_i32, %arg1 : i32, i32, i32
  }
  func.func @transform_3(%arg0: i32, %arg1: i32) -> (i32, i32, i32, i32) {
    %c0_i32 = arith.constant 0 : i32
    %c0_i32_0 = arith.constant 0 : i32
    %c0_i32_1 = arith.constant 0 : i32
    return %arg0, %arg1, %c0_i32, %c0_i32_0 : i32, i32, i32, i32
  }
}

module attributes {stable_mosaic.version = 11 : i64} {
  func.func @_conv_stats_kernel(%arg0: i32, %arg1: i32, %arg2: memref<1x256x128xbf16, #tpu.memory_space<vmem>>, %arg3: memref<32x256xbf16, #tpu.memory_space<vmem>>, %arg4: memref<1x32x128xf32, #tpu.memory_space<vmem>>, %arg5: memref<1x1x32x2xf32, #tpu.memory_space<vmem>>) attributes {dimension_semantics = [#tpu.dimension_semantics<parallel>, #tpu.dimension_semantics<parallel>], iteration_bounds = array<i64: 2, 1>, scalar_prefetch = 0 : i64, scratch_operands = 0 : i64, tpu.core_type = #tpu.core_type<tc>, window_params = [{transform_indices = @transform_0, window_bounds = array<i64: 1, 256, 128>}, {pipeline_mode = #tpu.pipeline_mode<synchronous>, transform_indices = @transform_1, window_bounds = array<i64: 32, 256>}, {transform_indices = @transform_2, window_bounds = array<i64: 1, 32, 128>}, {transform_indices = @transform_3, window_bounds = array<i64: 1, 1, 32, 2>}]} {
    %c0 = arith.constant 0 : index
    %c0_0 = arith.constant 0 : index
    %c0_1 = arith.constant 0 : index
    %0 = vector.load %arg2[%c0, %c0_0, %c0_1] : memref<1x256x128xbf16, #tpu.memory_space<vmem>>, vector<1x256x128xbf16>
    %1 = vector.shape_cast %0 : vector<1x256x128xbf16> to vector<256x128xbf16>
    %c0_2 = arith.constant 0 : index
    %c0_3 = arith.constant 0 : index
    %2 = vector.load %arg3[%c0_2, %c0_3] : memref<32x256xbf16, #tpu.memory_space<vmem>>, vector<32x256xbf16>
    %cst = arith.constant dense<0.000000e+00> : vector<32x128xf32>
    %3 = tpu.matmul %2, %1, %cst {dimension_numbers = #tpu.dot_dimension_numbers<[1], [0], [0], [1], [0, 0, 1, 1], [], []>} : vector<32x256xbf16>, vector<256x128xbf16>, vector<32x128xf32> -> vector<32x128xf32>
    %c0_4 = arith.constant 0 : index
    %c0_5 = arith.constant 0 : index
    %c0_6 = arith.constant 0 : index
    %4 = vector.load %arg4[%c0_4, %c0_5, %c0_6] : memref<1x32x128xf32, #tpu.memory_space<vmem>>, vector<1x32x128xf32>
    %5 = vector.shape_cast %4 : vector<1x32x128xf32> to vector<32x128xf32>
    %6 = vector.shape_cast %3 : vector<32x128xf32> to vector<1x32x128xf32>
    tpu.vector_store %arg4[%c0_4, %c0_5, %c0_6], %6 {strides = array<i32>} : memref<1x32x128xf32, #tpu.memory_space<vmem>>, vector<1x32x128xf32>,
    %cst_7 = arith.constant dense<0.000000e+00> : vector<32xf32>
    %7 = vector.multi_reduction <add>, %3, %cst_7 [1] : vector<32x128xf32> to vector<32xf32>
    %8 = vector.shape_cast %7 : vector<32xf32> to vector<32x1xf32>
    %9 = arith.mulf %3, %3 : vector<32x128xf32>
    %cst_8 = arith.constant dense<0.000000e+00> : vector<32xf32>
    %10 = vector.multi_reduction <add>, %9, %cst_8 [1] : vector<32x128xf32> to vector<32xf32>
    %11 = vector.shape_cast %10 : vector<32xf32> to vector<32x1xf32>
    %12 = tpu.concatenate %8, %11 in 1 : vector<32x1xf32>, vector<32x1xf32> -> vector<32x2xf32>
    %c0_9 = arith.constant 0 : index
    %c0_10 = arith.constant 0 : index
    %c0_11 = arith.constant 0 : index
    %c0_12 = arith.constant 0 : index
    %13 = vector.load %arg5[%c0_9, %c0_10, %c0_11, %c0_12] : memref<1x1x32x2xf32, #tpu.memory_space<vmem>>, vector<1x1x32x2xf32>
    %14 = vector.shape_cast %13 : vector<1x1x32x2xf32> to vector<32x2xf32>
    %15 = vector.shape_cast %12 : vector<32x2xf32> to vector<1x1x32x2xf32>
    tpu.vector_store %arg5[%c0_9, %c0_10, %c0_11, %c0_12], %15 {strides = array<i32>} : memref<1x1x32x2xf32, #tpu.memory_space<vmem>>, vector<1x1x32x2xf32>,
    return
  }
  func.func @transform_0(%arg0: i32, %arg1: i32) -> (i32, i32, i32) {
    %c0_i32 = arith.constant 0 : i32
    %c0_i32_0 = arith.constant 0 : i32
    return %arg0, %c0_i32, %arg1 : i32, i32, i32
  }
  func.func @transform_1(%arg0: i32, %arg1: i32) -> (i32, i32) {
    %c0_i32 = arith.constant 0 : i32
    %c0_i32_0 = arith.constant 0 : i32
    %c0_i32_1 = arith.constant 0 : i32
    return %c0_i32, %c0_i32_0 : i32, i32
  }
  func.func @transform_2(%arg0: i32, %arg1: i32) -> (i32, i32, i32) {
    %c0_i32 = arith.constant 0 : i32
    %c0_i32_0 = arith.constant 0 : i32
    return %arg0, %c0_i32, %arg1 : i32, i32, i32
  }
  func.func @transform_3(%arg0: i32, %arg1: i32) -> (i32, i32, i32, i32) {
    %c0_i32 = arith.constant 0 : i32
    %c0_i32_0 = arith.constant 0 : i32
    %c0_i32_1 = arith.constant 0 : i32
    return %arg0, %arg1, %c0_i32, %c0_i32_0 : i32, i32, i32, i32
  }
}

module attributes {stable_mosaic.version = 11 : i64} {
  func.func @_finish_kernel(%arg0: i32, %arg1: i32, %arg2: memref<1x32x128xf32, #tpu.memory_space<vmem>>, %arg3: memref<1x32x2xf32, #tpu.memory_space<vmem>>, %arg4: memref<1x32x128xf32, #tpu.memory_space<vmem>>) attributes {dimension_semantics = [#tpu.dimension_semantics<parallel>, #tpu.dimension_semantics<parallel>], iteration_bounds = array<i64: 2, 1>, scalar_prefetch = 0 : i64, scratch_operands = 0 : i64, tpu.core_type = #tpu.core_type<tc>, window_params = [{transform_indices = @transform_0, window_bounds = array<i64: 1, 32, 128>}, {transform_indices = @transform_1, window_bounds = array<i64: 1, 32, 2>}, {transform_indices = @transform_2, window_bounds = array<i64: 1, 32, 128>}]} {
    %c0 = arith.constant 0 : index
    %c0_0 = arith.constant 0 : index
    %c0_1 = arith.constant 0 : index
    %0 = vector.load %arg2[%c0, %c0_0, %c0_1] : memref<1x32x128xf32, #tpu.memory_space<vmem>>, vector<1x32x128xf32>
    %1 = vector.shape_cast %0 : vector<1x32x128xf32> to vector<32x128xf32>
    %c0_2 = arith.constant 0 : index
    %c0_3 = arith.constant 0 : index
    %c0_4 = arith.constant 0 : index
    %2 = vector.load %arg3[%c0_2, %c0_3, %c0_4] : memref<1x32x2xf32, #tpu.memory_space<vmem>>, vector<1x32x1xf32>
    %3 = vector.shape_cast %2 : vector<1x32x1xf32> to vector<32x1xf32>
    %c0_5 = arith.constant 0 : index
    %c0_6 = arith.constant 0 : index
    %c1 = arith.constant 1 : index
    %4 = vector.load %arg3[%c0_5, %c0_6, %c1] : memref<1x32x2xf32, #tpu.memory_space<vmem>>, vector<1x32x1xf32>
    %5 = vector.shape_cast %4 : vector<1x32x1xf32> to vector<32x1xf32>
    %6 = vector.broadcast %3 : vector<32x1xf32> to vector<32x128xf32>
    %7 = arith.mulf %1, %6 : vector<32x128xf32>
    %8 = vector.broadcast %5 : vector<32x1xf32> to vector<32x128xf32>
    %9 = arith.addf %7, %8 : vector<32x128xf32>
    %cst = arith.constant 0.000000e+00 : f32
    %10 = vector.broadcast %cst : f32 to vector<32x128xf32>
    %11 = arith.maximumf %9, %10 : vector<32x128xf32>
    %c0_7 = arith.constant 0 : index
    %c0_8 = arith.constant 0 : index
    %c0_9 = arith.constant 0 : index
    %12 = vector.load %arg4[%c0_7, %c0_8, %c0_9] : memref<1x32x128xf32, #tpu.memory_space<vmem>>, vector<1x32x128xf32>
    %13 = vector.shape_cast %12 : vector<1x32x128xf32> to vector<32x128xf32>
    %14 = vector.shape_cast %11 : vector<32x128xf32> to vector<1x32x128xf32>
    tpu.vector_store %arg4[%c0_7, %c0_8, %c0_9], %14 {strides = array<i32>} : memref<1x32x128xf32, #tpu.memory_space<vmem>>, vector<1x32x128xf32>,
    return
  }
  func.func @transform_0(%arg0: i32, %arg1: i32) -> (i32, i32, i32) {
    %c0_i32 = arith.constant 0 : i32
    %c0_i32_0 = arith.constant 0 : i32
    return %arg0, %c0_i32, %arg1 : i32, i32, i32
  }
  func.func @transform_1(%arg0: i32, %arg1: i32) -> (i32, i32, i32) {
    %c0_i32 = arith.constant 0 : i32
    %c0_i32_0 = arith.constant 0 : i32
    %c0_i32_1 = arith.constant 0 : i32
    return %arg0, %c0_i32, %c0_i32_0 : i32, i32, i32
  }
  func.func @transform_2(%arg0: i32, %arg1: i32) -> (i32, i32, i32) {
    %c0_i32 = arith.constant 0 : i32
    %c0_i32_0 = arith.constant 0 : i32
    return %arg0, %c0_i32, %arg1 : i32, i32, i32
  }
}

module attributes {stable_mosaic.version = 11 : i64} {
  func.func @_finish_kernel_res(%arg0: i32, %arg1: i32, %arg2: memref<1x32x128xf32, #tpu.memory_space<vmem>>, %arg3: memref<1x32x2xf32, #tpu.memory_space<vmem>>, %arg4: memref<1x32x128xf32, #tpu.memory_space<vmem>>, %arg5: memref<1x32x128xf32, #tpu.memory_space<vmem>>) attributes {dimension_semantics = [#tpu.dimension_semantics<parallel>, #tpu.dimension_semantics<parallel>], iteration_bounds = array<i64: 2, 1>, scalar_prefetch = 0 : i64, scratch_operands = 0 : i64, tpu.core_type = #tpu.core_type<tc>, window_params = [{transform_indices = @transform_0, window_bounds = array<i64: 1, 32, 128>}, {transform_indices = @transform_1, window_bounds = array<i64: 1, 32, 2>}, {transform_indices = @transform_2, window_bounds = array<i64: 1, 32, 128>}, {transform_indices = @transform_3, window_bounds = array<i64: 1, 32, 128>}]} {
    %c0 = arith.constant 0 : index
    %c0_0 = arith.constant 0 : index
    %c0_1 = arith.constant 0 : index
    %0 = vector.load %arg2[%c0, %c0_0, %c0_1] : memref<1x32x128xf32, #tpu.memory_space<vmem>>, vector<1x32x128xf32>
    %1 = vector.shape_cast %0 : vector<1x32x128xf32> to vector<32x128xf32>
    %c0_2 = arith.constant 0 : index
    %c0_3 = arith.constant 0 : index
    %c0_4 = arith.constant 0 : index
    %2 = vector.load %arg3[%c0_2, %c0_3, %c0_4] : memref<1x32x2xf32, #tpu.memory_space<vmem>>, vector<1x32x1xf32>
    %3 = vector.shape_cast %2 : vector<1x32x1xf32> to vector<32x1xf32>
    %c0_5 = arith.constant 0 : index
    %c0_6 = arith.constant 0 : index
    %c1 = arith.constant 1 : index
    %4 = vector.load %arg3[%c0_5, %c0_6, %c1] : memref<1x32x2xf32, #tpu.memory_space<vmem>>, vector<1x32x1xf32>
    %5 = vector.shape_cast %4 : vector<1x32x1xf32> to vector<32x1xf32>
    %6 = vector.broadcast %3 : vector<32x1xf32> to vector<32x128xf32>
    %7 = arith.mulf %1, %6 : vector<32x128xf32>
    %8 = vector.broadcast %5 : vector<32x1xf32> to vector<32x128xf32>
    %9 = arith.addf %7, %8 : vector<32x128xf32>
    %c0_7 = arith.constant 0 : index
    %c0_8 = arith.constant 0 : index
    %c0_9 = arith.constant 0 : index
    %10 = vector.load %arg4[%c0_7, %c0_8, %c0_9] : memref<1x32x128xf32, #tpu.memory_space<vmem>>, vector<1x32x128xf32>
    %11 = vector.shape_cast %10 : vector<1x32x128xf32> to vector<32x128xf32>
    %12 = arith.addf %9, %11 : vector<32x128xf32>
    %c0_10 = arith.constant 0 : index
    %c0_11 = arith.constant 0 : index
    %c0_12 = arith.constant 0 : index
    %13 = vector.load %arg5[%c0_10, %c0_11, %c0_12] : memref<1x32x128xf32, #tpu.memory_space<vmem>>, vector<1x32x128xf32>
    %14 = vector.shape_cast %13 : vector<1x32x128xf32> to vector<32x128xf32>
    %15 = vector.shape_cast %12 : vector<32x128xf32> to vector<1x32x128xf32>
    tpu.vector_store %arg5[%c0_10, %c0_11, %c0_12], %15 {strides = array<i32>} : memref<1x32x128xf32, #tpu.memory_space<vmem>>, vector<1x32x128xf32>,
    return
  }
  func.func @transform_0(%arg0: i32, %arg1: i32) -> (i32, i32, i32) {
    %c0_i32 = arith.constant 0 : i32
    %c0_i32_0 = arith.constant 0 : i32
    return %arg0, %c0_i32, %arg1 : i32, i32, i32
  }
  func.func @transform_1(%arg0: i32, %arg1: i32) -> (i32, i32, i32) {
    %c0_i32 = arith.constant 0 : i32
    %c0_i32_0 = arith.constant 0 : i32
    %c0_i32_1 = arith.constant 0 : i32
    return %arg0, %c0_i32, %c0_i32_0 : i32, i32, i32
  }
  func.func @transform_2(%arg0: i32, %arg1: i32) -> (i32, i32, i32) {
    %c0_i32 = arith.constant 0 : i32
    %c0_i32_0 = arith.constant 0 : i32
    return %arg0, %c0_i32, %arg1 : i32, i32, i32
  }
  func.func @transform_3(%arg0: i32, %arg1: i32) -> (i32, i32, i32) {
    %c0_i32 = arith.constant 0 : i32
    %c0_i32_0 = arith.constant 0 : i32
    return %arg0, %c0_i32, %arg1 : i32, i32, i32
  }
}

module attributes {stable_mosaic.version = 11 : i64} {
  func.func @_conv_stats_kernel(%arg0: i32, %arg1: i32, %arg2: memref<1x288x128xbf16, #tpu.memory_space<vmem>>, %arg3: memref<32x288xbf16, #tpu.memory_space<vmem>>, %arg4: memref<1x32x128xf32, #tpu.memory_space<vmem>>, %arg5: memref<1x1x32x2xf32, #tpu.memory_space<vmem>>) attributes {dimension_semantics = [#tpu.dimension_semantics<parallel>, #tpu.dimension_semantics<parallel>], iteration_bounds = array<i64: 2, 1>, scalar_prefetch = 0 : i64, scratch_operands = 0 : i64, tpu.core_type = #tpu.core_type<tc>, window_params = [{transform_indices = @transform_0, window_bounds = array<i64: 1, 288, 128>}, {pipeline_mode = #tpu.pipeline_mode<synchronous>, transform_indices = @transform_1, window_bounds = array<i64: 32, 288>}, {transform_indices = @transform_2, window_bounds = array<i64: 1, 32, 128>}, {transform_indices = @transform_3, window_bounds = array<i64: 1, 1, 32, 2>}]} {
    %c0 = arith.constant 0 : index
    %c0_0 = arith.constant 0 : index
    %c0_1 = arith.constant 0 : index
    %0 = vector.load %arg2[%c0, %c0_0, %c0_1] : memref<1x288x128xbf16, #tpu.memory_space<vmem>>, vector<1x288x128xbf16>
    %1 = vector.shape_cast %0 : vector<1x288x128xbf16> to vector<288x128xbf16>
    %c0_2 = arith.constant 0 : index
    %c0_3 = arith.constant 0 : index
    %2 = vector.load %arg3[%c0_2, %c0_3] : memref<32x288xbf16, #tpu.memory_space<vmem>>, vector<32x288xbf16>
    %cst = arith.constant dense<0.000000e+00> : vector<32x128xf32>
    %3 = tpu.matmul %2, %1, %cst {dimension_numbers = #tpu.dot_dimension_numbers<[1], [0], [0], [1], [0, 0, 1, 1], [], []>} : vector<32x288xbf16>, vector<288x128xbf16>, vector<32x128xf32> -> vector<32x128xf32>
    %c0_4 = arith.constant 0 : index
    %c0_5 = arith.constant 0 : index
    %c0_6 = arith.constant 0 : index
    %4 = vector.load %arg4[%c0_4, %c0_5, %c0_6] : memref<1x32x128xf32, #tpu.memory_space<vmem>>, vector<1x32x128xf32>
    %5 = vector.shape_cast %4 : vector<1x32x128xf32> to vector<32x128xf32>
    %6 = vector.shape_cast %3 : vector<32x128xf32> to vector<1x32x128xf32>
    tpu.vector_store %arg4[%c0_4, %c0_5, %c0_6], %6 {strides = array<i32>} : memref<1x32x128xf32, #tpu.memory_space<vmem>>, vector<1x32x128xf32>,
    %cst_7 = arith.constant dense<0.000000e+00> : vector<32xf32>
    %7 = vector.multi_reduction <add>, %3, %cst_7 [1] : vector<32x128xf32> to vector<32xf32>
    %8 = vector.shape_cast %7 : vector<32xf32> to vector<32x1xf32>
    %9 = arith.mulf %3, %3 : vector<32x128xf32>
    %cst_8 = arith.constant dense<0.000000e+00> : vector<32xf32>
    %10 = vector.multi_reduction <add>, %9, %cst_8 [1] : vector<32x128xf32> to vector<32xf32>
    %11 = vector.shape_cast %10 : vector<32xf32> to vector<32x1xf32>
    %12 = tpu.concatenate %8, %11 in 1 : vector<32x1xf32>, vector<32x1xf32> -> vector<32x2xf32>
    %c0_9 = arith.constant 0 : index
    %c0_10 = arith.constant 0 : index
    %c0_11 = arith.constant 0 : index
    %c0_12 = arith.constant 0 : index
    %13 = vector.load %arg5[%c0_9, %c0_10, %c0_11, %c0_12] : memref<1x1x32x2xf32, #tpu.memory_space<vmem>>, vector<1x1x32x2xf32>
    %14 = vector.shape_cast %13 : vector<1x1x32x2xf32> to vector<32x2xf32>
    %15 = vector.shape_cast %12 : vector<32x2xf32> to vector<1x1x32x2xf32>
    tpu.vector_store %arg5[%c0_9, %c0_10, %c0_11, %c0_12], %15 {strides = array<i32>} : memref<1x1x32x2xf32, #tpu.memory_space<vmem>>, vector<1x1x32x2xf32>,
    return
  }
  func.func @transform_0(%arg0: i32, %arg1: i32) -> (i32, i32, i32) {
    %c0_i32 = arith.constant 0 : i32
    %c0_i32_0 = arith.constant 0 : i32
    return %arg0, %c0_i32, %arg1 : i32, i32, i32
  }
  func.func @transform_1(%arg0: i32, %arg1: i32) -> (i32, i32) {
    %c0_i32 = arith.constant 0 : i32
    %c0_i32_0 = arith.constant 0 : i32
    %c0_i32_1 = arith.constant 0 : i32
    return %c0_i32, %c0_i32_0 : i32, i32
  }
  func.func @transform_2(%arg0: i32, %arg1: i32) -> (i32, i32, i32) {
    %c0_i32 = arith.constant 0 : i32
    %c0_i32_0 = arith.constant 0 : i32
    return %arg0, %c0_i32, %arg1 : i32, i32, i32
  }
  func.func @transform_3(%arg0: i32, %arg1: i32) -> (i32, i32, i32, i32) {
    %c0_i32 = arith.constant 0 : i32
    %c0_i32_0 = arith.constant 0 : i32
    %c0_i32_1 = arith.constant 0 : i32
    return %arg0, %arg1, %c0_i32, %c0_i32_0 : i32, i32, i32, i32
  }
}

</mosaic_0001>

<bundles_post_ra>
// kernel: encoder1_forward.15
= control target key start
LH: loop header
LB: loop body
LE: loop exit
PB: predicated region body
PF: predicated region fallthrough
CT: control target
= control target key end

     0   :  { %s402_s9 = smov 0   ;;  %s404_s10 = smov 0   ;;  %s438_s0 = inlined_call_operand.vmem [shape: f32[2,8,256], index: 0, kind: input, shape index: {}]   ;;  %s439_s1 = inlined_call_operand.vmem [shape: f32[2,8,2], index: 1, kind: input, shape index: {}]   ;;  %s440_s2 = inlined_call_operand.vmem [shape: f32[2,8,256], index: 2, kind: output, shape index: {}]  }
   0x1   :  { %s406_s11 = smov 0  }
   0x2 LB: > { %s24_s12 = sadd.s32 1, %s379_s10  ;;  %p323_p0 = scmp.ge.s32.totalorder %s383_s11, 1  ;;  %s383_s11 = sphi %s406_s11, %s12_s11   ;;  %s379_s10 = sphi %s404_s10, %s442_s10   ;;  %s375_s9 = sphi %s402_s9, %s441_s9  }
   0x3   : > { %p26_p1 = scmp.ge.s32.totalorder %s24_s12, 2  ;;  %p142_p2 = scmp.lt.s32.totalorder %s383_s11, 3 }
   0x5   : > { %s444_s12 = smov (%p26_p1, %s24_s12), 0  ;;  %p143_p3 = pnand %p323_p0, %p142_p2 }
   0x6   : > { %p177_p4 = scmp.lt.s32.totalorder (!%p143_p3), %s375_s9, 1  ;;  %v385_v0 = vmov (!%p143_p3), 0   ;;  %v386_v2 = vmov (!%p143_p3), 1  }
   0x7   : > { %146 = sbr.rel (%p143_p3) target bundleno = 156 (0x9c), region = 28  ;;  %359 = vset.pattern.permute.xlu0 (!%p143_p3), %v385_v0 }
   0xe   : > { %s446_s9 = smov (!%p177_p4, %s375_s9), 1 }
   0xf   : > { %s326_s13 = sshll.u32 %s446_s9, 3  ;;  %s331_s17 = sshll.u32 %s446_s9, 4 }
  0x10   : > { %s189_s16 = scalar_lea.vmem %s439_s1, %s326_s13  ;;  %s184_s20 = scalar_lea.vmem %s438_s0, %s331_s17 }
  0x11   : > { %v202_v1 = vld [vmem:[%s189_s16] sm:$0xff]  ;;  %v201_v5 = vld [vmem:[%s184_s20 + $0x8] sm:$0xff]  ;;  %s198_s23 = scalar_lea.vmem %s440_s2, %s331_s17 }
  0x12   : > { %205 = vperm.xlu0 %359, %v202_v1   ;;  %v200_v4 = vld [vmem:[%s184_s20] sm:$0xff] }
  0x16   : > { %360 = vset.pattern.permute.xlu0 %v386_v2 }
  0x17   : > { %211 = vperm.xlu0 %360, %v202_v1  }
  0x91   : > { %v206_v3 = vpop.permute.xlu0 %205 }
  0x92   : > { %v208_v6 = vmul.f32 %v206_v3, %v200_v4  ;;  %v209_v7 = vmul.f32 %v206_v3, %v201_v5 }
  0x96   : > { %v212_v8 = vpop.permute.xlu0 %211 }
  0x97   : > { %v214_v9 = vadd.f32 %v212_v8, %v208_v6  ;;  %v215_v10 = vadd.f32 %v212_v8, %v209_v7 }
  0x99   : > { %v216_v11 = vmax.f32 %v214_v9, 0.0  ;;  %v217_v12 = vmax.f32 %v215_v10, 0.0 }
  0x9b   : > { %218 = vst [vmem:[%s198_s23] sm:$0xff] %v216_v11  ;;  %219 = vst [vmem:[%s198_s23 + $0x8] sm:$0xff] %v217_v12 }
  0x9c PF: > { %s12_s11 = sadd.s32 1, %s383_s11   ;;  %s441_s9 = smov %s379_s10 }
  0x9d   : > { %p9_p5 = scmp.ge.s32.totalorder %s12_s11, 4   ;;  %s442_s10 = smov %s444_s12 }
  0x9f   :  { %11 = sbr.rel (!%p9_p5) target bundleno = 2 (0x2), region = 61 }

// kernel: encoder1_forward.14
= control target key start
LH: loop header
LB: loop body
LE: loop exit
PB: predicated region body
PF: predicated region fallthrough
CT: control target
= control target key end

     0   :  { %s685_s12 = smov 0   ;;  %s687_s13 = smov 0   ;;  %s750_s0 = inlined_call_operand.vmem [shape: bf16[2,147,256], index: 0, kind: input, shape index: {}]   ;;  %s751_s1 = inlined_call_operand.vmem [shape: bf16[8,147], index: 1, kind: input, shape index: {}]   ;;  %s752_s2 = inlined_call_operand.vmem [shape: f32[2,8,256], index: 2, kind: output, shape index: {0}]   ;;  %s753_s3 = inlined_call_operand.vmem [shape: f32[2,1,8,2], index: 3, kind: output, shape index: {1}]  }
   0x1   :  { %s689_s14 = smov 0  }
   0x2 LB: > { %s26_s15 = sadd.s32 1, %s658_s13  ;;  %p552_p0 = scmp.ge.s32.totalorder %s662_s14, 1  ;;  %s662_s14 = sphi %s689_s14, %s14_s14   ;;  %s658_s13 = sphi %s687_s13, %s755_s13   ;;  %s654_s12 = sphi %s685_s12, %s754_s12  }
   0x3   : > { %p28_p1 = scmp.ge.s32.totalorder %s26_s15, 2  ;;  %p163_p2 = scmp.lt.s32.totalorder %s662_s14, 3 }
   0x5   : > { %s757_s15 = smov (%p28_p1, %s26_s15), 0  ;;  %p164_p3 = pnand %p552_p0, %p163_p2 }
   0x6   : > { %p203_p4 = scmp.lt.s32.totalorder (!%p164_p3), %s654_s12, 1  ;;  %v249_v0 = vld [vmem:[%s751_s1] sm:$0xff] (!%p164_p3)  ;;  %vm351_vm0 = vcmask (!%p164_p3), 154624   ;;  %vm355_vm1 = vcmask (!%p164_p3), 1040384   ;;  %vm356_vm2 = vcmask (!%p164_p3), 1041408   ;;  %v664_v18 = vmov (!%p164_p3), 65535  }
   0x7   : > { %167 = sbr.rel (%p164_p3) target bundleno = 422 (0x1a6), region = 28  ;;  %v558_v1 = vcombine.high (!%p164_p3), %v249_v0, %v249_v0  ;;  %v357_v19 = vsel (!%p164_p3), %vm355_vm1, 4294967295, %v664_v18  ;;  %v557_v28 = vcombine.low (!%p164_p3), %v249_v0, %v249_v0  ;;  %vm416_vm3 = vcmask (!%p164_p3), 7168  }
   0x8   : > { %v358_v23 = vsel (!%p164_p3), %vm356_vm2, %v357_v19, 0  ;;  %vm418_vm4 = vcmask (!%p164_p3), 15360  }
   0x9   : > { %579 = vmatprep.mubr.msk.bf16.mxu0 (!%p164_p3), %vm351_vm0, %v558_v1 }
   0xe   : > { %s759_s12 = smov (!%p203_p4, %s654_s12), 1 }
   0xf   : > { %s583_s18 = smul.u32 152, %s759_s12  ;;  %s582_s22 = sshll.u32 %s759_s12, 4 }
  0x10   : > { %s220_s25 = scalar_lea.vmem %s752_s2, %s582_s22  ;;  %s556_s26 = sshll.u32 %s759_s12, 3 }
  0x11   : > { %s712_s21 = scalar_lea.vmem %s750_s0, %s583_s18  ;;  %s228_s29 = scalar_lea.vmem %s753_s3, %s556_s26 }
  0x12   : > { %v609_v2 = vld [vmem:[%s712_s21 + $0x4] ss:$8 sps:$4 sm:$0xff]   ;;  %v611_v3 = vld [vmem:[%s712_s21] ss:$8 sps:$4 sm:$0xff]   ;;  %v612_v4 = vld [vmem:[%s712_s21 + $0x14] ss:$8 sps:$4 sm:$0xff]  }
  0x13   : > { %365 = vmatprep.subr.bf16.mxu0 %v609_v2  ;;  %v614_v5 = vld [vmem:[%s712_s21 + $0x10] ss:$8 sps:$4 sm:$0xff]   ;;  %v615_v6 = vld [vmem:[%s712_s21 + $0x24] ss:$8 sps:$4 sm:$0xff]   ;;  %v617_v7 = vld [vmem:[%s712_s21 + $0x20] ss:$8 sps:$4 sm:$0xff]  }
  0x14   : > { %366 = vmatpush1.bf16.msra.mxu0 %v611_v3  ;;  %v618_v8 = vld [vmem:[%s712_s21 + $0x34] ss:$8 sps:$4 sm:$0xff]   ;;  %v620_v9 = vld [vmem:[%s712_s21 + $0x30] ss:$8 sps:$4 sm:$0xff]   ;;  %v621_v10 = vld [vmem:[%s712_s21 + $0x44] ss:$8 sps:$4 sm:$0xff]  }
  0x15   : > { %367 = vmatprep.subr.bf16.mxu0 %v612_v4  ;;  %v623_v11 = vld [vmem:[%s712_s21 + $0x40] ss:$8 sps:$4 sm:$0xff]   ;;  %v624_v12 = vld [vmem:[%s712_s21 + $0x54] ss:$8 sps:$4 sm:$0xff]   ;;  %v626_v13 = vld [vmem:[%s712_s21 + $0x50] ss:$8 sps:$4 sm:$0xff]  }
  0x16   : > { %v627_v14 = vld [vmem:[%s712_s21 + $0x64] ss:$8 sps:$4 sm:$0xff]   ;;  %v629_v15 = vld [vmem:[%s712_s21 + $0x60] ss:$8 sps:$4 sm:$0xff]   ;;  %v630_v16 = vld [vmem:[%s712_s21 + $0x74] ss:$8 sps:$4 sm:$0xff]  }
  0x17   : > { %v248_v17 = vld [vmem:[%s712_s21 + $0x90] sm:$0x33]  ;;  %v633_v21 = vld [vmem:[%s712_s21 + $0x84] ss:$8 sps:$4 sm:$0xff]   ;;  %v635_v24 = vld [vmem:[%s712_s21 + $0x80] ss:$8 sps:$4 sm:$0xff]  }
  0x18   : > { %368 = vmatpush1.bf16.msra.mxu0 %v614_v5  ;;  %v632_v20 = vld [vmem:[%s712_s21 + $0x70] ss:$8 sps:$4 sm:$0xff]   ;;  %v578_v22 = vcombine.high %v248_v17, %v248_v17  ;;  %v577_v25 = vcombine.low %v248_v17, %v248_v17 }
  0x19   : > { %369 = vmatprep.subr.bf16.mxu0 %v615_v6 }
  0x1a   : > { %v363_v26 = vand.u32 %v578_v22, %v358_v23  ;;  %v360_v27 = vand.u32 %v577_v25, %v358_v23 }
  0x1c   : > { %370 = vmatpush1.bf16.msra.mxu0 %v617_v7 }
  0x1d   : > { %371 = vmatprep.subr.bf16.mxu0 %v618_v8 }
  0x20   : > { %372 = vmatpush1.bf16.msra.mxu0 %v620_v9 }
  0x21   : > { %373 = vmatprep.subr.bf16.mxu0 %v621_v10 }
  0x24   : > { %374 = vmatpush1.bf16.msra.mxu0 %v623_v11 }
  0x25   : > { %375 = vmatprep.subr.bf16.mxu0 %v624_v12 }
  0x28   : > { %376 = vmatpush1.bf16.msra.mxu0 %v626_v13 }
  0x29   : > { %377 = vmatprep.subr.bf16.mxu0 %v627_v14 }
  0x2c   : > { %378 = vmatpush1.bf16.msra.mxu0 %v629_v15 }
  0x2d   : > { %379 = vmatprep.subr.bf16.mxu0 %v630_v16 }
  0x30   : > { %380 = vmatpush1.bf16.msra.mxu0 %v632_v20 }
  0x31   : > { %381 = vmatprep.subr.bf16.mxu0 %v633_v21 }
  0x34   : > { %382 = vmatpush1.bf16.msra.mxu0 %v635_v24 }
  0x35   : > { %383 = vmatprep.subr.bf16.mxu0 %v363_v26 }
  0x38   : > { %384 = vmatpush1.bf16.msra.mxu0 %v360_v27 }
  0x3b   : > { %398 = vmatmul.mubr.bf16.vlgmr.msra.gmra.mrb[0].mxu0 %v557_v28 }
 0x10e   : > { %v399_v29 = vpop.f32.mrb[0].mxu0 }
 0x10f   : > { %406 = vst [vmem:[%s220_s25] sm:$0xff] %v399_v29  ;;  %v401_v30 = vpop.f32.mrb[1].mxu0  ;;  %v411_v31 = vmul.f32 %v399_v29, %v399_v29 }
 0x110   : > { %407 = vst [vmem:[%s220_s25 + $0x8] sm:$0xff] %v401_v30  ;;  %v403_v32 = vpop.f32.mrb[2].mxu0  ;;  %v408_v33 = vadd.f32 %v401_v30, %v399_v29  ;;  %v412_v34 = vmul.f32 %v401_v30, %v401_v30 }
 0x111   : > { %v404_v35 = vpop.f32.mrb[3].mxu0 }
 0x112   : > { %409 = vadd.xlane.f32.xlu0 %v408_v33  ;;  %v413_v36 = vadd.f32 %v412_v34, %v411_v31 }
 0x116   : > { %414 = vadd.xlane.f32.xlu0 %v413_v36 }
 0x19f   : > { %v410_v37 = vpop.xlane.xlu0 %409 }
 0x1a3   : > { %v415_v38 = vpop.xlane.xlu0 %414 }
 0x1a4   : > { %v417_v39 = vsel %vm416_vm3, %v410_v37, %v415_v38 }
 0x1a5   : > { %419 = vst.msk [vmem:[%s228_s29] sm:$0xff] %vm418_vm4, %v417_v39 }
 0x1a6 PF: > { %s14_s14 = sadd.s32 1, %s662_s14   ;;  %s754_s12 = smov %s658_s13 }
 0x1a7   : > { %p11_p5 = scmp.ge.s32.totalorder %s14_s14, 4   ;;  %s755_s13 = smov %s757_s15 }
 0x1a9   :  { %13 = sbr.rel (!%p11_p5) target bundleno = 2 (0x2), region = 70 }

// kernel: encoder1_forward.17
= control target key start
LH: loop header
LB: loop body
LE: loop exit
PB: predicated region body
PF: predicated region fallthrough
CT: control target
= control target key end

     0   :  { %s406_s9 = smov 0   ;;  %s408_s10 = smov 0   ;;  %s442_s0 = inlined_call_operand.vmem [shape: f32[2,16,128], index: 0, kind: input, shape index: {}]   ;;  %s443_s1 = inlined_call_operand.vmem [shape: f32[2,16,2], index: 1, kind: input, shape index: {}]   ;;  %s444_s2 = inlined_call_operand.vmem [shape: f32[2,16,128], index: 2, kind: output, shape index: {}]  }
   0x1   :  { %s410_s11 = smov 0  }
   0x2 LB: > { %s24_s12 = sadd.s32 1, %s383_s10  ;;  %p324_p0 = scmp.ge.s32.totalorder %s387_s11, 1  ;;  %s387_s11 = sphi %s410_s11, %s12_s11   ;;  %s383_s10 = sphi %s408_s10, %s446_s10   ;;  %s379_s9 = sphi %s406_s9, %s445_s9  }
   0x3   : > { %p26_p1 = scmp.ge.s32.totalorder %s24_s12, 2  ;;  %p141_p2 = scmp.lt.s32.totalorder %s387_s11, 3 }
   0x5   : > { %s448_s12 = smov (%p26_p1, %s24_s12), 0  ;;  %p142_p3 = pnand %p324_p0, %p141_p2 }
   0x6   : > { %p174_p4 = scmp.lt.s32.totalorder (!%p142_p3), %s379_s9, 1  ;;  %v389_v0 = vmov (!%p142_p3), 1   ;;  %v390_v1 = vmov (!%p142_p3), 0  }
   0x7   : > { %145 = sbr.rel (%p142_p3) target bundleno = 157 (0x9d), region = 28  ;;  %363 = vset.pattern.permute.xlu1 (!%p142_p3), %v389_v0  ;;  %362 = vset.pattern.permute.xlu0 (!%p142_p3), %v390_v1 }
   0xe   : > { %s450_s9 = smov (!%p174_p4, %s379_s9), 1 }
   0xf   : > { %s333_s13 = sshll.u32 %s450_s9, 4 }
  0x10   : > { %s186_s16 = scalar_lea.vmem %s443_s1, %s333_s13  ;;  %s181_s19 = scalar_lea.vmem %s442_s0, %s333_s13 }
  0x11   : > { %v197_v2 = vld [vmem:[%s186_s16] sm:$0xff]  ;;  %v198_v3 = vld [vmem:[%s186_s16 + $0x8] sm:$0xff]  ;;  %s194_s22 = scalar_lea.vmem %s444_s2, %s333_s13 }
  0x12   : > { %212 = vperm.xlu1 %363, %v197_v2   ;;  %201 = vperm.xlu0 %362, %v197_v2   ;;  %v195_v4 = vld [vmem:[%s181_s19] sm:$0xff]  ;;  %v196_v8 = vld [vmem:[%s181_s19 + $0x8] sm:$0xff] }
  0x16   : > { %216 = vperm.xlu1 %363, %v198_v3   ;;  %206 = vperm.xlu0 %362, %v198_v3  }
  0x1a   : > { %364 = vset.pattern.permute.xlu0 %v389_v0 }
  0x91   : > { %v213_v5 = vpop.permute.xlu1 %212  ;;  %v202_v6 = vpop.permute.xlu0 %201 }
  0x92   : > { %v209_v7 = vmul.f32 %v202_v6, %v195_v4 }
  0x94   : > { %v219_v9 = vadd.f32 %v213_v5, %v209_v7 }
  0x95   : > { %v207_v10 = vpop.permute.xlu0 %206  ;;  %v217_v13 = vpop.permute.xlu1 %216 }
  0x96   : > { %v221_v11 = vmax.f32 %v219_v9, 0.0  ;;  %v210_v12 = vmul.f32 %v207_v10, %v196_v8 }
  0x98   : > { %223 = vst [vmem:[%s194_s22] sm:$0xff] %v221_v11  ;;  %v220_v14 = vadd.f32 %v217_v13, %v210_v12 }
  0x9a   : > { %v222_v15 = vmax.f32 %v220_v14, 0.0 }
  0x9c   : > { %224 = vst [vmem:[%s194_s22 + $0x8] sm:$0xff] %v222_v15 }
  0x9d PF: > { %s12_s11 = sadd.s32 1, %s387_s11   ;;  %s445_s9 = smov %s383_s10 }
  0x9e   : > { %p9_p5 = scmp.ge.s32.totalorder %s12_s11, 4   ;;  %s446_s10 = smov %s448_s12 }
  0xa0   :  { %11 = sbr.rel (!%p9_p5) target bundleno = 2 (0x2), region = 61 }

// kernel: encoder1_forward.16
= control target key start
LH: loop header
LB: loop body
LE: loop exit
PB: predicated region body
PF: predicated region fallthrough
CT: control target
= control target key end

     0   :  { %s628_s12 = smov 0   ;;  %s630_s13 = smov 0   ;;  %s671_s0 = inlined_call_operand.vmem [shape: bf16[2,128,128], index: 0, kind: input, shape index: {}]   ;;  %s672_s1 = inlined_call_operand.vmem [shape: bf16[16,128], index: 1, kind: input, shape index: {}]   ;;  %s673_s2 = inlined_call_operand.vmem [shape: f32[2,16,128], index: 2, kind: output, shape index: {0}]   ;;  %s674_s3 = inlined_call_operand.vmem [shape: f32[2,1,16,2], index: 3, kind: output, shape index: {1}]  }
   0x1   :  { %s632_s14 = smov 0  }
   0x2 LB: > { %s26_s15 = sadd.s32 1, %s600_s13  ;;  %p497_p0 = scmp.ge.s32.totalorder %s604_s14, 1  ;;  %s604_s14 = sphi %s632_s14, %s14_s14   ;;  %s600_s13 = sphi %s630_s13, %s676_s13   ;;  %s596_s12 = sphi %s628_s12, %s675_s12  }
   0x3   : > { %p28_p1 = scmp.ge.s32.totalorder %s26_s15, 2  ;;  %p161_p2 = scmp.lt.s32.totalorder %s604_s14, 3 }
   0x5   : > { %s678_s15 = smov (%p28_p1, %s26_s15), 0  ;;  %p162_p3 = pnand %p497_p0, %p161_p2 }
   0x6   : > { %p200_p4 = scmp.lt.s32.totalorder (!%p162_p3), %s596_s12, 1  ;;  %v606_v0 = vmov (!%p162_p3), 0.0   ;;  %vm607_vm0 = vmmov (!%p162_p3), 0   ;;  %v581_v9 = vld [vmem:[%s672_s1] sm:$0xff] (!%p162_p3)   ;;  %vm351_vm1 = vcmask (!%p162_p3), 7168   ;;  %vm354_vm2 = vcmask (!%p162_p3), 15360  }
   0x7   : > { %165 = sbr.rel (%p162_p3) target bundleno = 411 (0x19b), region = 28  ;;  %527 = vmatprep.subr.bf16.mxu0 (!%p162_p3), %v606_v0  ;;  %543 = vmatprep.mubr.msk.bf16.mxu0 (!%p162_p3), %vm607_vm0, %v606_v0 }
   0xe   : > { %s680_s12 = smov (!%p200_p4, %s596_s12), 1 }
   0xf   : > { %s515_s16 = sshll.u32 %s680_s12, 6  ;;  %s516_s22 = sshll.u32 %s680_s12, 4 }
  0x10   : > { %s207_s19 = scalar_lea.vmem %s671_s0, %s515_s16  ;;  %s215_s25 = scalar_lea.vmem %s673_s2, %s516_s22 }
  0x11   : > { %v573_v1 = vld [vmem:[%s207_s19] sm:$0xff]   ;;  %v574_v2 = vld [vmem:[%s207_s19 + $0x8] sm:$0xff]   ;;  %v575_v3 = vld [vmem:[%s207_s19 + $0x10] sm:$0xff]   ;;  %s224_s28 = scalar_lea.vmem %s674_s3, %s516_s22 }
  0x12   : > { %528 = vmatpush3.bf16.msra.mxu0 %v573_v1  ;;  %v576_v4 = vld [vmem:[%s207_s19 + $0x18] sm:$0xff]   ;;  %v577_v5 = vld [vmem:[%s207_s19 + $0x20] sm:$0xff]   ;;  %v578_v6 = vld [vmem:[%s207_s19 + $0x28] sm:$0xff]  }
  0x13   : > { %529 = vmatprep.subr.bf16.mxu0 %v606_v0  ;;  %v579_v7 = vld [vmem:[%s207_s19 + $0x30] sm:$0xff]   ;;  %v580_v8 = vld [vmem:[%s207_s19 + $0x38] sm:$0xff]  }
  0x16   : > { %530 = vmatpush3.bf16.msra.mxu0 %v574_v2 }
  0x17   : > { %531 = vmatprep.subr.bf16.mxu0 %v606_v0 }
  0x1a   : > { %532 = vmatpush3.bf16.msra.mxu0 %v575_v3 }
  0x1b   : > { %533 = vmatprep.subr.bf16.mxu0 %v606_v0 }
  0x1e   : > { %534 = vmatpush3.bf16.msra.mxu0 %v576_v4 }
  0x1f   : > { %535 = vmatprep.subr.bf16.mxu0 %v606_v0 }
  0x22   : > { %536 = vmatpush3.bf16.msra.mxu0 %v577_v5 }
  0x23   : > { %537 = vmatprep.subr.bf16.mxu0 %v606_v0 }
  0x26   : > { %538 = vmatpush3.bf16.msra.mxu0 %v578_v6 }
  0x27   : > { %539 = vmatprep.subr.bf16.mxu0 %v606_v0 }
  0x2a   : > { %540 = vmatpush3.bf16.msra.mxu0 %v579_v7 }
  0x2b   : > { %541 = vmatprep.subr.bf16.mxu0 %v606_v0 }
  0x2e   : > { %542 = vmatpush3.bf16.msra.mxu0 %v580_v8 }
  0x31   : > { %544 = vmatmul.mubr.bf16.vlgmr.msra.gmra.mrb[0].mxu0 %v581_v9 }
 0x104   : > { %v332_v10 = vpop.f32.mrb[0].mxu0 }
 0x105   : > { %339 = vst [vmem:[%s215_s25] sm:$0xff] %v332_v10  ;;  %341 = vadd.xlane.f32.xlu0 %v332_v10  ;;  %v545_v11 = vpop.f32.mrb[1].mxu0  ;;  %v345_v12 = vmul.f32 %v332_v10, %v332_v10 }
 0x106   : > { %v335_v13 = vpop.f32.mrb[2].mxu0 }
 0x107   : > { %340 = vst [vmem:[%s215_s25 + $0x8] sm:$0xff] %v335_v13  ;;  %347 = vadd.xlane.f32.xlu1 %v345_v12  ;;  %v546_v14 = vpop.f32.mrb[3].mxu0  ;;  %v346_v15 = vmul.f32 %v335_v13, %v335_v13 }
 0x109   : > { %343 = vadd.xlane.f32.xlu0 %v335_v13 }
 0x10b   : > { %349 = vadd.xlane.f32.xlu1 %v346_v15 }
 0x192   : > { %v342_v16 = vpop.xlane.xlu0 %341 }
 0x194   : > { %v348_v17 = vpop.xlane.xlu1 %347 }
 0x195   : > { %v352_v18 = vsel %vm351_vm1, %v342_v16, %v348_v17 }
 0x196   : > { %355 = vst.msk [vmem:[%s224_s28] sm:$0xff] %vm354_vm2, %v352_v18  ;;  %v344_v19 = vpop.xlane.xlu0 %343 }
 0x198   : > { %v350_v20 = vpop.xlane.xlu1 %349 }
 0x199   : > { %v353_v21 = vsel %vm351_vm1, %v344_v19, %v350_v20 }
 0x19a   : > { %356 = vst.msk [vmem:[%s224_s28 + $0x8] sm:$0xff] %vm354_vm2, %v353_v21 }
 0x19b PF: > { %s14_s14 = sadd.s32 1, %s604_s14   ;;  %s675_s12 = smov %s600_s13 }
 0x19c   : > { %p11_p5 = scmp.ge.s32.totalorder %s14_s14, 4   ;;  %s676_s13 = smov %s678_s15 }
 0x19e   :  { %13 = sbr.rel (!%p11_p5) target bundleno = 2 (0x2), region = 70 }

// kernel: encoder1_forward.19
= control target key start
LH: loop header
LB: loop body
LE: loop exit
PB: predicated region body
PF: predicated region fallthrough
CT: control target
= control target key end

     0   :  { %s437_s9 = smov 0   ;;  %s439_s10 = smov 0   ;;  %s478_s0 = inlined_call_operand.vmem [shape: f32[2,32,128], index: 0, kind: input, shape index: {}]   ;;  %s479_s1 = inlined_call_operand.vmem [shape: f32[2,32,2], index: 1, kind: input, shape index: {}]   ;;  %s480_s2 = inlined_call_operand.vmem [shape: f32[2,32,128], index: 2, kind: output, shape index: {}]  }
   0x1   :  { %s441_s11 = smov 0  }
   0x2 LB: > { %s24_s12 = sadd.s32 1, %s414_s10  ;;  %p354_p0 = scmp.ge.s32.totalorder %s418_s11, 1  ;;  %s418_s11 = sphi %s441_s11, %s12_s11   ;;  %s414_s10 = sphi %s439_s10, %s482_s10   ;;  %s410_s9 = sphi %s437_s9, %s481_s9  }
   0x3   : > { %p26_p1 = scmp.ge.s32.totalorder %s24_s12, 2  ;;  %p141_p2 = scmp.lt.s32.totalorder %s418_s11, 3 }
   0x5   : > { %s484_s12 = smov (%p26_p1, %s24_s12), 0  ;;  %p142_p3 = pnand %p354_p0, %p141_p2 }
   0x6   : > { %p174_p4 = scmp.lt.s32.totalorder (!%p142_p3), %s410_s9, 1  ;;  %v420_v0 = vmov (!%p142_p3), 0   ;;  %v421_v5 = vmov (!%p142_p3), 1  }
   0x7   : > { %145 = sbr.rel (%p142_p3) target bundleno = 164 (0xa4), region = 28  ;;  %393 = vset.pattern.permute.xlu1 (!%p142_p3), %v420_v0  ;;  %392 = vset.pattern.permute.xlu0 (!%p142_p3), %v420_v0 }
   0xe   : > { %s486_s9 = smov (!%p174_p4, %s410_s9), 1 }
   0xf   : > { %s455_s13 = sshll.u32 %s486_s9, 5 }
  0x10   : > { %s186_s16 = scalar_lea.vmem %s479_s1, %s455_s13  ;;  %s181_s19 = scalar_lea.vmem %s478_s0, %s455_s13 }
  0x11   : > { %v201_v1 = vld [vmem:[%s186_s16 + $0x10] sm:$0xff]  ;;  %v199_v2 = vld [vmem:[%s186_s16] sm:$0xff]  ;;  %v202_v3 = vld [vmem:[%s186_s16 + $0x18] sm:$0xff]  ;;  %s194_s22 = scalar_lea.vmem %s480_s2, %s455_s13 }
  0x12   : > { %215 = vperm.xlu1 %393, %v201_v1   ;;  %205 = vperm.xlu0 %392, %v199_v2   ;;  %v200_v4 = vld [vmem:[%s186_s16 + $0x8] sm:$0xff]  ;;  %v195_v10 = vld [vmem:[%s181_s19] sm:$0xff]  ;;  %v197_v14 = vld [vmem:[%s181_s19 + $0x10] sm:$0xff] }
  0x13   : > { %v196_v11 = vld [vmem:[%s181_s19 + $0x8] sm:$0xff]  ;;  %v198_v15 = vld [vmem:[%s181_s19 + $0x18] sm:$0xff] }
  0x16   : > { %220 = vperm.xlu1 %393, %v202_v3   ;;  %210 = vperm.xlu0 %392, %v200_v4  }
  0x1a   : > { %395 = vset.pattern.permute.xlu1 %v421_v5  ;;  %394 = vset.pattern.permute.xlu0 %v421_v5 }
  0x1b   : > { %232 = vperm.xlu1 %395, %v200_v4   ;;  %228 = vperm.xlu0 %394, %v199_v2  }
  0x1f   : > { %236 = vperm.xlu1 %395, %v201_v1   ;;  %240 = vperm.xlu0 %394, %v202_v3  }
  0x91   : > { %v216_v6 = vpop.permute.xlu1 %215  ;;  %v206_v7 = vpop.permute.xlu0 %205 }
  0x92   : > { %v223_v12 = vmul.f32 %v206_v7, %v195_v10  ;;  %v225_v20 = vmul.f32 %v216_v6, %v197_v14 }
  0x95   : > { %v221_v8 = vpop.permute.xlu1 %220  ;;  %v211_v9 = vpop.permute.xlu0 %210 }
  0x96   : > { %v224_v13 = vmul.f32 %v211_v9, %v196_v11  ;;  %v226_v21 = vmul.f32 %v221_v8, %v198_v15 }
  0x9a   : > { %v233_v16 = vpop.permute.xlu1 %232  ;;  %v229_v17 = vpop.permute.xlu0 %228 }
  0x9b   : > { %v244_v18 = vadd.f32 %v233_v16, %v224_v13  ;;  %v243_v19 = vadd.f32 %v229_v17, %v223_v12 }
  0x9d   : > { %v248_v22 = vmax.f32 %v244_v18, 0.0  ;;  %v247_v23 = vmax.f32 %v243_v19, 0.0 }
  0x9e   : > { %v237_v24 = vpop.permute.xlu1 %236  ;;  %v241_v25 = vpop.permute.xlu0 %240 }
  0x9f   : > { %252 = vst [vmem:[%s194_s22 + $0x8] sm:$0xff] %v248_v22  ;;  %251 = vst [vmem:[%s194_s22] sm:$0xff] %v247_v23  ;;  %v245_v26 = vadd.f32 %v237_v24, %v225_v20  ;;  %v246_v27 = vadd.f32 %v241_v25, %v226_v21 }
  0xa1   : > { %v249_v28 = vmax.f32 %v245_v26, 0.0  ;;  %v250_v29 = vmax.f32 %v246_v27, 0.0 }
  0xa3   : > { %253 = vst [vmem:[%s194_s22 + $0x10] sm:$0xff] %v249_v28  ;;  %254 = vst [vmem:[%s194_s22 + $0x18] sm:$0xff] %v250_v29 }
  0xa4 PF: > { %s12_s11 = sadd.s32 1, %s418_s11   ;;  %s481_s9 = smov %s414_s10 }
  0xa5   : > { %p9_p5 = scmp.ge.s32.totalorder %s12_s11, 4   ;;  %s482_s10 = smov %s484_s12 }
  0xa7   :  { %11 = sbr.rel (!%p9_p5) target bundleno = 2 (0x2), region = 61 }

// kernel: encoder1_forward.18
= control target key start
LH: loop header
LB: loop body
LE: loop exit
PB: predicated region body
PF: predicated region fallthrough
CT: control target
= control target key end

     0   :  { %s767_s12 = smov 0   ;;  %s769_s13 = smov 0   ;;  %s841_s0 = inlined_call_operand.vmem [shape: bf16[2,256,128], index: 0, kind: input, shape index: {}]   ;;  %s842_s1 = inlined_call_operand.vmem [shape: bf16[32,256], index: 1, kind: input, shape index: {}]   ;;  %s843_s2 = inlined_call_operand.vmem [shape: f32[2,32,128], index: 2, kind: output, shape index: {0}]   ;;  %s844_s3 = inlined_call_operand.vmem [shape: f32[2,1,32,2], index: 3, kind: output, shape index: {1}]  }
   0x1   :  { %s771_s14 = smov 0  }
   0x2 LB: > { %s26_s15 = sadd.s32 1, %s741_s13  ;;  %p601_p0 = scmp.ge.s32.totalorder %s745_s14, 1  ;;  %s745_s14 = sphi %s771_s14, %s14_s14   ;;  %s741_s13 = sphi %s769_s13, %s846_s13   ;;  %s737_s12 = sphi %s767_s12, %s845_s12  }
   0x3   : > { %p28_p1 = scmp.ge.s32.totalorder %s26_s15, 2  ;;  %p161_p2 = scmp.lt.s32.totalorder %s745_s14, 3 }
   0x5   : > { %s848_s15 = smov (%p28_p1, %s26_s15), 0  ;;  %p162_p3 = pnand %p601_p0, %p161_p2 }
   0x6   : > { %p200_p4 = scmp.lt.s32.totalorder (!%p162_p3), %s737_s12, 1  ;;  %v719_v0 = vld [vmem:[%s842_s1 + $0x4] ss:$8 sps:$4 sm:$0xff] (!%p162_p3)   ;;  %v722_v1 = vld [vmem:[%s842_s1 + $0x14] ss:$8 sps:$4 sm:$0xff] (!%p162_p3)   ;;  %vm451_vm0 = vcmask (!%p162_p3), 7168  }
   0x7   : > { %165 = sbr.rel (%p162_p3) target bundleno = 421 (0x1a5), region = 28  ;;  %410 = vmatprep.mubr.bf16.mxu0 (!%p162_p3), %v719_v0  ;;  %418 = vmatprep.mubr.bf16.mxu1 (!%p162_p3), %v722_v1  ;;  %v717_v18 = vld [vmem:[%s842_s1] ss:$8 sps:$4 sm:$0xff] (!%p162_p3)   ;;  %v720_v19 = vld [vmem:[%s842_s1 + $0x10] ss:$8 sps:$4 sm:$0xff] (!%p162_p3)   ;;  %vm456_vm1 = vcmask (!%p162_p3), 15360  }
   0xe   : > { %s850_s12 = smov (!%p200_p4, %s737_s12), 1 }
   0xf   : > { %s630_s20 = sshll.u32 %s850_s12, 7  ;;  %s631_s28 = sshll.u32 %s850_s12, 5 }
  0x10   : > { %s797_s23 = scalar_lea.vmem %s841_s0, %s630_s20  ;;  %s215_s4 = scalar_lea.vmem %s843_s2, %s631_s28 }
  0x11   : > { %v701_v2 = vld [vmem:[%s797_s23 + $0x40] sm:$0xff]   ;;  %v703_v4 = vld [vmem:[%s797_s23 + $0x48] sm:$0xff]   ;;  %v705_v6 = vld [vmem:[%s797_s23 + $0x50] sm:$0xff]   ;;  %s224_s7 = scalar_lea.vmem %s844_s3, %s631_s28 }
  0x12   : > { %v702_v3 = vld [vmem:[%s797_s23] sm:$0xff]   ;;  %633 = vmatprep.subr.bf16.mxu0 %v701_v2  ;;  %661 = vmatprep.subr.bf16.mxu1 %v701_v2  ;;  %v704_v5 = vld [vmem:[%s797_s23 + $0x8] sm:$0xff]   ;;  %v706_v7 = vld [vmem:[%s797_s23 + $0x10] sm:$0xff]  }
  0x13   : > { %634 = vmatpush3.bf16.msra.mxu0 %v702_v3  ;;  %669 = vmatpush3.bf16.msra.mxu1 %v702_v3  ;;  %v707_v8 = vld [vmem:[%s797_s23 + $0x58] sm:$0xff]   ;;  %v709_v10 = vld [vmem:[%s797_s23 + $0x60] sm:$0xff]   ;;  %v711_v12 = vld [vmem:[%s797_s23 + $0x68] sm:$0xff]  }
  0x14   : > { %635 = vmatprep.subr.bf16.mxu0 %v703_v4  ;;  %662 = vmatprep.subr.bf16.mxu1 %v703_v4  ;;  %v708_v9 = vld [vmem:[%s797_s23 + $0x18] sm:$0xff]   ;;  %v710_v11 = vld [vmem:[%s797_s23 + $0x20] sm:$0xff]   ;;  %v712_v13 = vld [vmem:[%s797_s23 + $0x28] sm:$0xff]  }
  0x15   : > { %v713_v14 = vld [vmem:[%s797_s23 + $0x70] sm:$0xff]   ;;  %v715_v16 = vld [vmem:[%s797_s23 + $0x78] sm:$0xff]  }
  0x16   : > { %v714_v15 = vld [vmem:[%s797_s23 + $0x30] sm:$0xff]   ;;  %v716_v17 = vld [vmem:[%s797_s23 + $0x38] sm:$0xff]  }
  0x17   : > { %636 = vmatpush3.bf16.msra.mxu0 %v704_v5  ;;  %670 = vmatpush3.bf16.msra.mxu1 %v704_v5 }
  0x18   : > { %637 = vmatprep.subr.bf16.mxu0 %v705_v6  ;;  %663 = vmatprep.subr.bf16.mxu1 %v705_v6 }
  0x1b   : > { %638 = vmatpush3.bf16.msra.mxu0 %v706_v7  ;;  %671 = vmatpush3.bf16.msra.mxu1 %v706_v7 }
  0x1c   : > { %639 = vmatprep.subr.bf16.mxu0 %v707_v8  ;;  %664 = vmatprep.subr.bf16.mxu1 %v707_v8 }
  0x1f   : > { %640 = vmatpush3.bf16.msra.mxu0 %v708_v9  ;;  %672 = vmatpush3.bf16.msra.mxu1 %v708_v9 }
  0x20   : > { %641 = vmatprep.subr.bf16.mxu0 %v709_v10  ;;  %665 = vmatprep.subr.bf16.mxu1 %v709_v10 }
  0x23   : > { %642 = vmatpush3.bf16.msra.mxu0 %v710_v11  ;;  %673 = vmatpush3.bf16.msra.mxu1 %v710_v11 }
  0x24   : > { %643 = vmatprep.subr.bf16.mxu0 %v711_v12  ;;  %666 = vmatprep.subr.bf16.mxu1 %v711_v12 }
  0x27   : > { %644 = vmatpush3.bf16.msra.mxu0 %v712_v13  ;;  %674 = vmatpush3.bf16.msra.mxu1 %v712_v13 }
  0x28   : > { %645 = vmatprep.subr.bf16.mxu0 %v713_v14  ;;  %667 = vmatprep.subr.bf16.mxu1 %v713_v14 }
  0x2b   : > { %646 = vmatpush3.bf16.msra.mxu0 %v714_v15  ;;  %675 = vmatpush3.bf16.msra.mxu1 %v714_v15 }
  0x2c   : > { %647 = vmatprep.subr.bf16.mxu0 %v715_v16  ;;  %668 = vmatprep.subr.bf16.mxu1 %v715_v16 }
  0x2f   : > { %648 = vmatpush3.bf16.msra.mxu0 %v716_v17  ;;  %676 = vmatpush3.bf16.msra.mxu1 %v716_v17 }
  0x32   : > { %411 = vmatmul.mubr.bf16.vlgmr.msra.gmra.mrb[0].mxu0 %v717_v18  ;;  %419 = vmatmul.mubr.bf16.vlgmr.msra.gmra.mrb[0].mxu1 %v720_v19 }
 0x105   : > { %v649_v20 = vpop.f32.mrb[0].mxu0  ;;  %v655_v21 = vpop.f32.mrb[0].mxu1 }
 0x106   : > { %v650_v22 = vpop.f32.mrb[1].mxu0  ;;  %v656_v23 = vpop.f32.mrb[1].mxu1 }
 0x107   : > { %v651_v24 = vadd.f32 %v650_v22, %v649_v20  ;;  %v657_v25 = vadd.f32 %v656_v23, %v655_v21  ;;  %v652_v26 = vpop.f32.mrb[2].mxu0  ;;  %v658_v27 = vpop.f32.mrb[2].mxu1 }
 0x108   : > { %v653_v28 = vpop.f32.mrb[3].mxu0  ;;  %v659_v29 = vpop.f32.mrb[3].mxu1 }
 0x109   : > { %427 = vst [vmem:[%s215_s4] sm:$0xff] %v651_v24  ;;  %429 = vst [vmem:[%s215_s4 + $0x10] sm:$0xff] %v657_v25  ;;  %v654_v30 = vadd.f32 %v653_v28, %v652_v26  ;;  %v660_v31 = vadd.f32 %v659_v29, %v658_v27  ;;  %435 = vadd.xlane.f32.xlu1 %v657_v25  ;;  %431 = vadd.xlane.f32.xlu0 %v651_v24 }
 0x10a   : > { %v439_v33 = vmul.f32 %v651_v24, %v651_v24  ;;  %v441_v35 = vmul.f32 %v657_v25, %v657_v25 }
 0x10b   : > { %428 = vst [vmem:[%s215_s4 + $0x8] sm:$0xff] %v654_v30  ;;  %430 = vst [vmem:[%s215_s4 + $0x18] sm:$0xff] %v660_v31  ;;  %v440_v32 = vmul.f32 %v654_v30, %v654_v30  ;;  %v442_v34 = vmul.f32 %v660_v31, %v660_v31 }
 0x10d   : > { %437 = vadd.xlane.f32.xlu1 %v660_v31  ;;  %433 = vadd.xlane.f32.xlu0 %v654_v30 }
 0x111   : > { %445 = vadd.xlane.f32.xlu1 %v440_v32  ;;  %443 = vadd.xlane.f32.xlu0 %v439_v33 }
 0x115   : > { %449 = vadd.xlane.f32.xlu1 %v442_v34  ;;  %447 = vadd.xlane.f32.xlu0 %v441_v35 }
 0x196   : > { %v436_v36 = vpop.xlane.xlu1 %435  ;;  %v432_v37 = vpop.xlane.xlu0 %431 }
 0x19a   : > { %v438_v38 = vpop.xlane.xlu1 %437  ;;  %v434_v39 = vpop.xlane.xlu0 %433 }
 0x19e   : > { %v446_v40 = vpop.xlane.xlu1 %445  ;;  %v444_v41 = vpop.xlane.xlu0 %443 }
 0x19f   : > { %v453_v42 = vsel %vm451_vm0, %v434_v39, %v446_v40  ;;  %v452_v43 = vsel %vm451_vm0, %v432_v37, %v444_v41 }
 0x1a0   : > { %458 = vst.msk [vmem:[%s224_s7 + $0x8] sm:$0xff] %vm456_vm1, %v453_v42  ;;  %457 = vst.msk [vmem:[%s224_s7] sm:$0xff] %vm456_vm1, %v452_v43 }
 0x1a2   : > { %v450_v44 = vpop.xlane.xlu1 %449  ;;  %v448_v45 = vpop.xlane.xlu0 %447 }
 0x1a3   : > { %v455_v46 = vsel %vm451_vm0, %v438_v38, %v450_v44  ;;  %v454_v47 = vsel %vm451_vm0, %v436_v36, %v448_v45 }
 0x1a4   : > { %460 = vst.msk [vmem:[%s224_s7 + $0x18] sm:$0xff] %vm456_vm1, %v455_v46  ;;  %459 = vst.msk [vmem:[%s224_s7 + $0x10] sm:$0xff] %vm456_vm1, %v454_v47 }
 0x1a5 PF: > { %s14_s14 = sadd.s32 1, %s745_s14   ;;  %s845_s12 = smov %s741_s13 }
 0x1a6   : > { %p11_p5 = scmp.ge.s32.totalorder %s14_s14, 4   ;;  %s846_s13 = smov %s848_s15 }
 0x1a8   :  { %13 = sbr.rel (!%p11_p5) target bundleno = 2 (0x2), region = 70 }

// kernel: encoder1_forward.23
= control target key start
LH: loop header
LB: loop body
LE: loop exit
PB: predicated region body
PF: predicated region fallthrough
CT: control target
= control target key end

     0   :  { %s525_s12 = smov 0   ;;  %s527_s13 = smov 0   ;;  %s570_s0 = inlined_call_operand.vmem [shape: f32[2,32,128], index: 0, kind: input, shape index: {}]   ;;  %s571_s1 = inlined_call_operand.vmem [shape: f32[2,32,2], index: 1, kind: input, shape index: {}]   ;;  %s572_s2 = inlined_call_operand.vmem [shape: f32[2,32,128], index: 2, kind: input, shape index: {}]   ;;  %s573_s3 = inlined_call_operand.vmem [shape: f32[2,32,128], index: 3, kind: output, shape index: {}]  }
   0x1   :  { %s529_s14 = smov 0  }
   0x2 LB: > { %s25_s15 = sadd.s32 1, %s497_s13  ;;  %p434_p0 = scmp.ge.s32.totalorder %s501_s14, 1  ;;  %s501_s14 = sphi %s529_s14, %s13_s14   ;;  %s497_s13 = sphi %s527_s13, %s575_s13   ;;  %s493_s12 = sphi %s525_s12, %s574_s12  }
   0x3   : > { %p27_p1 = scmp.ge.s32.totalorder %s25_s15, 2  ;;  %p181_p2 = scmp.lt.s32.totalorder %s501_s14, 3 }
   0x5   : > { %s577_s15 = smov (%p27_p1, %s25_s15), 0  ;;  %p182_p3 = pnand %p434_p0, %p181_p2 }
   0x6   : > { %p224_p4 = scmp.lt.s32.totalorder (!%p182_p3), %s493_s12, 1  ;;  %v503_v0 = vmov (!%p182_p3), 0   ;;  %v504_v5 = vmov (!%p182_p3), 1  }
   0x7   : > { %185 = sbr.rel (%p182_p3) target bundleno = 164 (0xa4), region = 32  ;;  %476 = vset.pattern.permute.xlu1 (!%p182_p3), %v503_v0  ;;  %475 = vset.pattern.permute.xlu0 (!%p182_p3), %v503_v0 }
   0xe   : > { %s579_s12 = smov (!%p224_p4, %s493_s12), 1 }
   0xf   : > { %s543_s16 = sshll.u32 %s579_s12, 5 }
  0x10   : > { %s236_s19 = scalar_lea.vmem %s571_s1, %s543_s16  ;;  %s231_s22 = scalar_lea.vmem %s570_s0, %s543_s16 }
  0x11   : > { %v259_v1 = vld [vmem:[%s236_s19 + $0x10] sm:$0xff]  ;;  %v257_v2 = vld [vmem:[%s236_s19] sm:$0xff]  ;;  %v260_v3 = vld [vmem:[%s236_s19 + $0x18] sm:$0xff]  ;;  %s244_s25 = scalar_lea.vmem %s572_s2, %s543_s16  ;;  %s252_s28 = scalar_lea.vmem %s573_s3, %s543_s16 }
  0x12   : > { %273 = vperm.xlu1 %476, %v259_v1   ;;  %263 = vperm.xlu0 %475, %v257_v2   ;;  %v258_v4 = vld [vmem:[%s236_s19 + $0x8] sm:$0xff]  ;;  %v253_v10 = vld [vmem:[%s231_s22] sm:$0xff]  ;;  %v255_v12 = vld [vmem:[%s231_s22 + $0x10] sm:$0xff] }
  0x13   : > { %v254_v11 = vld [vmem:[%s231_s22 + $0x8] sm:$0xff]  ;;  %v256_v15 = vld [vmem:[%s231_s22 + $0x18] sm:$0xff]  ;;  %v305_v18 = vld [vmem:[%s244_s25] sm:$0xff] }
  0x14   : > { %v306_v16 = vld [vmem:[%s244_s25 + $0x8] sm:$0xff]  ;;  %v307_v26 = vld [vmem:[%s244_s25 + $0x10] sm:$0xff]  ;;  %v308_v28 = vld [vmem:[%s244_s25 + $0x18] sm:$0xff] }
  0x16   : > { %278 = vperm.xlu1 %476, %v260_v3   ;;  %268 = vperm.xlu0 %475, %v258_v4  }
  0x1a   : > { %478 = vset.pattern.permute.xlu1 %v504_v5  ;;  %477 = vset.pattern.permute.xlu0 %v504_v5 }
  0x1b   : > { %290 = vperm.xlu1 %478, %v258_v4   ;;  %286 = vperm.xlu0 %477, %v257_v2  }
  0x1f   : > { %294 = vperm.xlu1 %478, %v259_v1   ;;  %298 = vperm.xlu0 %477, %v260_v3  }
  0x91   : > { %v274_v6 = vpop.permute.xlu1 %273  ;;  %v264_v7 = vpop.permute.xlu0 %263 }
  0x92   : > { %v281_v13 = vmul.f32 %v264_v7, %v253_v10  ;;  %v283_v22 = vmul.f32 %v274_v6, %v255_v12 }
  0x95   : > { %v279_v8 = vpop.permute.xlu1 %278  ;;  %v269_v9 = vpop.permute.xlu0 %268 }
  0x96   : > { %v282_v14 = vmul.f32 %v269_v9, %v254_v11  ;;  %v284_v23 = vmul.f32 %v279_v8, %v256_v15 }
  0x9a   : > { %v291_v17 = vpop.permute.xlu1 %290  ;;  %v287_v19 = vpop.permute.xlu0 %286 }
  0x9b   : > { %v302_v20 = vadd.f32 %v291_v17, %v282_v14  ;;  %v301_v21 = vadd.f32 %v287_v19, %v281_v13 }
  0x9d   : > { %v310_v24 = vadd.f32 %v306_v16, %v302_v20  ;;  %v309_v25 = vadd.f32 %v305_v18, %v301_v21 }
  0x9e   : > { %v295_v27 = vpop.permute.xlu1 %294  ;;  %v299_v29 = vpop.permute.xlu0 %298 }
  0x9f   : > { %314 = vst [vmem:[%s252_s28 + $0x8] sm:$0xff] %v310_v24  ;;  %313 = vst [vmem:[%s252_s28] sm:$0xff] %v309_v25  ;;  %v303_v30 = vadd.f32 %v295_v27, %v283_v22  ;;  %v304_v31 = vadd.f32 %v299_v29, %v284_v23 }
  0xa1   : > { %v311_v32 = vadd.f32 %v307_v26, %v303_v30  ;;  %v312_v33 = vadd.f32 %v308_v28, %v304_v31 }
  0xa3   : > { %315 = vst [vmem:[%s252_s28 + $0x10] sm:$0xff] %v311_v32  ;;  %316 = vst [vmem:[%s252_s28 + $0x18] sm:$0xff] %v312_v33 }
  0xa4 PF: > { %s13_s14 = sadd.s32 1, %s501_s14   ;;  %s574_s12 = smov %s497_s13 }
  0xa5   : > { %p10_p5 = scmp.ge.s32.totalorder %s13_s14, 4   ;;  %s575_s13 = smov %s577_s15 }
  0xa7   :  { %12 = sbr.rel (!%p10_p5) target bundleno = 2 (0x2), region = 68 }

// kernel: encoder1_forward.20
= control target key start
LH: loop header
LB: loop body
LE: loop exit
PB: predicated region body
PF: predicated region fallthrough
CT: control target
= control target key end

     0   :  { %s858_s12 = smov 0   ;;  %s860_s13 = smov 0   ;;  %s946_s0 = inlined_call_operand.vmem [shape: bf16[2,288,128], index: 0, kind: input, shape index: {}]   ;;  %s947_s1 = inlined_call_operand.vmem [shape: bf16[32,288], index: 1, kind: input, shape index: {}]   ;;  %s948_s2 = inlined_call_operand.vmem [shape: f32[2,32,128], index: 2, kind: output, shape index: {0}]   ;;  %s949_s3 = inlined_call_operand.vmem [shape: f32[2,1,32,2], index: 3, kind: output, shape index: {1}]  }
   0x1   :  { %s862_s14 = smov 0  }
   0x2 LB: > { %s26_s15 = sadd.s32 1, %s832_s13  ;;  %p687_p0 = scmp.ge.s32.totalorder %s836_s14, 1  ;;  %s836_s14 = sphi %s862_s14, %s14_s14   ;;  %s832_s13 = sphi %s860_s13, %s951_s13   ;;  %s828_s12 = sphi %s858_s12, %s950_s12  }
   0x3   : > { %p28_p1 = scmp.ge.s32.totalorder %s26_s15, 2  ;;  %p161_p2 = scmp.lt.s32.totalorder %s836_s14, 3 }
   0x5   : > { %s953_s15 = smov (%p28_p1, %s26_s15), 0  ;;  %p162_p3 = pnand %p687_p0, %p161_p2 }
   0x6   : > { %p200_p4 = scmp.lt.s32.totalorder (!%p162_p3), %s828_s12, 1  ;;  %vm408_vm0 = vcmask (!%p162_p3), 261120   ;;  %v806_v0 = vld [vmem:[%s947_s1 + $0x8] ss:$12 sps:$4 sm:$0xff] (!%p162_p3)   ;;  %v809_v1 = vld [vmem:[%s947_s1 + $0x4] ss:$12 sps:$4 sm:$0xff] (!%p162_p3)  }
   0x7   : > { %165 = sbr.rel (%p162_p3) target bundleno = 428 (0x1ac), region = 28  ;;  %759 = vmatprep.mubr.msk.bf16.mxu1 (!%p162_p3), %vm408_vm0, %v806_v0  ;;  %447 = vmatprep.mubr.bf16.mxu0 (!%p162_p3), %v809_v1  ;;  %v810_v15 = vld [vmem:[%s947_s1 + $0x20] ss:$12 sps:$4 sm:$0xff] (!%p162_p3)   ;;  %v811_v22 = vld [vmem:[%s947_s1 + $0x1c] ss:$12 sps:$4 sm:$0xff] (!%p162_p3)   ;;  %vm537_vm1 = vcmask (!%p162_p3), 7168  }
   0x8   : > { %v807_v21 = vld [vmem:[%s947_s1] ss:$12 sps:$4 sm:$0xff] (!%p162_p3)   ;;  %v813_v23 = vld [vmem:[%s947_s1 + $0x18] ss:$12 sps:$4 sm:$0xff] (!%p162_p3)   ;;  %vm542_vm2 = vcmask (!%p162_p3), 15360  }
   0xe   : > { %s955_s12 = smov (!%p200_p4, %s828_s12), 1 }
   0xf   : > { %s763_s20 = smul.u32 144, %s955_s12  ;;  %s721_s5 = sshll.u32 %s955_s12, 5 }
  0x10   : > { %s215_s8 = scalar_lea.vmem %s948_s2, %s721_s5  ;;  %s224_s11 = scalar_lea.vmem %s949_s3, %s721_s5 }
  0x11   : > { %s889_s23 = scalar_lea.vmem %s946_s0, %s763_s20 }
  0x12   : > { %v788_v2 = vld [vmem:[%s889_s23 + $0x40] sm:$0xff]   ;;  %v790_v4 = vld [vmem:[%s889_s23 + $0x48] sm:$0xff]   ;;  %v792_v6 = vld [vmem:[%s889_s23 + $0x50] sm:$0xff]  }
  0x13   : > { %v789_v3 = vld [vmem:[%s889_s23] sm:$0xff]   ;;  %723 = vmatprep.subr.bf16.mxu0 %v788_v2  ;;  %v791_v5 = vld [vmem:[%s889_s23 + $0x8] sm:$0xff]   ;;  %v793_v7 = vld [vmem:[%s889_s23 + $0x10] sm:$0xff]  }
  0x14   : > { %724 = vmatpush3.bf16.msra.mxu0 %v789_v3  ;;  %v794_v8 = vld [vmem:[%s889_s23 + $0x58] sm:$0xff]   ;;  %v796_v10 = vld [vmem:[%s889_s23 + $0x60] sm:$0xff]   ;;  %v803_v13 = vld [vmem:[%s889_s23 + $0x88] sm:$0xff]  }
  0x15   : > { %725 = vmatprep.subr.bf16.mxu0 %v790_v4  ;;  %v795_v9 = vld [vmem:[%s889_s23 + $0x18] sm:$0xff]   ;;  %v800_v11 = vld [vmem:[%s889_s23 + $0x80] sm:$0xff]   ;;  %v798_v14 = vld [vmem:[%s889_s23 + $0x68] sm:$0xff]  }
  0x16   : > { %v797_v12 = vld [vmem:[%s889_s23 + $0x20] sm:$0xff]   ;;  %755 = vmatprep.subr.bf16.mxu1 %v800_v11  ;;  %v799_v16 = vld [vmem:[%s889_s23 + $0x28] sm:$0xff]   ;;  %v801_v17 = vld [vmem:[%s889_s23 + $0x70] sm:$0xff]  }
  0x17   : > { %756 = vmatpush3.bf16.msra.mxu1 %v800_v11  ;;  %v802_v18 = vld [vmem:[%s889_s23 + $0x30] sm:$0xff]   ;;  %v804_v19 = vld [vmem:[%s889_s23 + $0x78] sm:$0xff]  }
  0x18   : > { %726 = vmatpush3.bf16.msra.mxu0 %v791_v5  ;;  %757 = vmatprep.subr.bf16.mxu1 %v803_v13  ;;  %v805_v20 = vld [vmem:[%s889_s23 + $0x38] sm:$0xff]  }
  0x19   : > { %727 = vmatprep.subr.bf16.mxu0 %v792_v6 }
  0x1b   : > { %758 = vmatpush3.bf16.msra.mxu1 %v803_v13 }
  0x1c   : > { %728 = vmatpush3.bf16.msra.mxu0 %v793_v7 }
  0x1d   : > { %729 = vmatprep.subr.bf16.mxu0 %v794_v8 }
  0x1e   : > { %760 = vmatmul.mubr.msk.bf16.vlgmr.msra.gmra.mrb[0].mxu1 %vm408_vm0, %v810_v15 }
  0x20   : > { %730 = vmatpush3.bf16.msra.mxu0 %v795_v9 }
  0x21   : > { %731 = vmatprep.subr.bf16.mxu0 %v796_v10 }
  0x24   : > { %732 = vmatpush3.bf16.msra.mxu0 %v797_v12 }
  0x25   : > { %733 = vmatprep.subr.bf16.mxu0 %v798_v14 }
  0x28   : > { %734 = vmatpush3.bf16.msra.mxu0 %v799_v16 }
  0x29   : > { %735 = vmatprep.subr.bf16.mxu0 %v801_v17 }
  0x2c   : > { %736 = vmatpush3.bf16.msra.mxu0 %v802_v18 }
  0x2d   : > { %737 = vmatprep.subr.bf16.mxu0 %v804_v19 }
  0x30   : > { %738 = vmatpush3.bf16.msra.mxu0 %v805_v20 }
  0x33   : > { %448 = vmatmul.mubr.bf16.vlgmr.msra.gmra.mrb[0].mxu0 %v807_v21 }
  0x34   : > { %455 = vmatprep.mubr.bf16.mxu0 %v811_v22 }
  0x3b   : > { %456 = vmatmul.mubr.bf16.gmra.mrb[4].mxu0 %v813_v23 }
  0xf1   : > { %v761_v24 = vpop.f32.mrb[0].mxu1 }
  0xf2   : > { %v498_v25 = vpop.f32.mrb[1].mxu1 }
  0xf3   : > { %v762_v26 = vpop.f32.mrb[2].mxu1 }
  0xf4   : > { %v501_v27 = vpop.f32.mrb[3].mxu1 }
 0x106   : > { %v739_v28 = vpop.f32.mrb[0].mxu0 }
 0x107   : > { %v740_v29 = vpop.f32.mrb[1].mxu0 }
 0x108   : > { %v741_v30 = vadd.f32 %v740_v29, %v739_v28  ;;  %v742_v31 = vpop.f32.mrb[2].mxu0 }
 0x109   : > { %v743_v32 = vpop.f32.mrb[3].mxu0 }
 0x10a   : > { %v499_v33 = vadd.f32 %v741_v30, %v498_v25  ;;  %v744_v34 = vadd.f32 %v743_v32, %v742_v31 }
 0x10c   : > { %513 = vst [vmem:[%s215_s8] sm:$0xff] %v499_v33  ;;  %v502_v35 = vadd.f32 %v744_v34, %v501_v27  ;;  %517 = vadd.xlane.f32.xlu0 %v499_v33  ;;  %v525_v44 = vmul.f32 %v499_v33, %v499_v33 }
 0x10e   : > { %514 = vst [vmem:[%s215_s8 + $0x8] sm:$0xff] %v502_v35  ;;  %v745_v36 = vpop.f32.mrb[4].mxu0  ;;  %v526_v37 = vmul.f32 %v502_v35, %v502_v35 }
 0x10f   : > { %v746_v38 = vpop.f32.mrb[5].mxu0 }
 0x110   : > { %v747_v39 = vadd.f32 %v746_v38, %v745_v36  ;;  %v748_v40 = vpop.f32.mrb[6].mxu0  ;;  %531 = vadd.xlane.f32.xlu1 %v526_v37  ;;  %519 = vadd.xlane.f32.xlu0 %v502_v35 }
 0x111   : > { %v749_v41 = vpop.f32.mrb[7].mxu0 }
 0x112   : > { %v507_v42 = vadd.f32 %v761_v24, %v747_v39  ;;  %v750_v43 = vadd.f32 %v749_v41, %v748_v40 }
 0x114   : > { %515 = vst [vmem:[%s215_s8 + $0x10] sm:$0xff] %v507_v42  ;;  %v510_v45 = vadd.f32 %v762_v26, %v750_v43  ;;  %521 = vadd.xlane.f32.xlu1 %v507_v42  ;;  %529 = vadd.xlane.f32.xlu0 %v525_v44  ;;  %v527_v46 = vmul.f32 %v507_v42, %v507_v42 }
 0x116   : > { %516 = vst [vmem:[%s215_s8 + $0x18] sm:$0xff] %v510_v45  ;;  %v528_v47 = vmul.f32 %v510_v45, %v510_v45 }
 0x118   : > { %523 = vadd.xlane.f32.xlu1 %v510_v45  ;;  %533 = vadd.xlane.f32.xlu0 %v527_v46 }
 0x11c   : > { %535 = vadd.xlane.f32.xlu1 %v528_v47 }
 0x199   : > { %v518_v48 = vpop.xlane.xlu0 %517 }
 0x19d   : > { %v532_v49 = vpop.xlane.xlu1 %531  ;;  %v520_v50 = vpop.xlane.xlu0 %519 }
 0x19e   : > { %v539_v51 = vsel %vm537_vm1, %v520_v50, %v532_v49 }
 0x19f   : > { %544 = vst.msk [vmem:[%s224_s11 + $0x8] sm:$0xff] %vm542_vm2, %v539_v51 }
 0x1a1   : > { %v522_v52 = vpop.xlane.xlu1 %521  ;;  %v530_v53 = vpop.xlane.xlu0 %529 }
 0x1a2   : > { %v538_v54 = vsel %vm537_vm1, %v518_v48, %v530_v53 }
 0x1a3   : > { %543 = vst.msk [vmem:[%s224_s11] sm:$0xff] %vm542_vm2, %v538_v54 }
 0x1a5   : > { %v524_v55 = vpop.xlane.xlu1 %523  ;;  %v534_v56 = vpop.xlane.xlu0 %533 }
 0x1a6   : > { %v540_v57 = vsel %vm537_vm1, %v522_v52, %v534_v56 }
 0x1a7   : > { %545 = vst.msk [vmem:[%s224_s11 + $0x10] sm:$0xff] %vm542_vm2, %v540_v57 }
 0x1a9   : > { %v536_v58 = vpop.xlane.xlu1 %535 }
 0x1aa   : > { %v541_v59 = vsel %vm537_vm1, %v524_v55, %v536_v58 }
 0x1ab   : > { %546 = vst.msk [vmem:[%s224_s11 + $0x18] sm:$0xff] %vm542_vm2, %v541_v59 }
 0x1ac PF: > { %s14_s14 = sadd.s32 1, %s836_s14   ;;  %s950_s12 = smov %s832_s13 }
 0x1ad   : > { %p11_p5 = scmp.ge.s32.totalorder %s14_s14, 4   ;;  %s951_s13 = smov %s953_s15 }
 0x1af   :  { %13 = sbr.rel (!%p11_p5) target bundleno = 2 (0x2), region = 70 }

</bundles_post_ra>
